<compile_context>
chip_gen: v6e
topology: v6e:2x2x1
jax: 0.10.0
libtpu: 0.0.40
codegen_flags: <defaults>
</compile_context>

<pallas_src>
import functools
import math

import jax
import jax.numpy as jnp
from jax.experimental import pallas as pl
from jax.experimental.pallas import tpu as pltpu

LN_EPS = 1e-5  # PyTorch nn.LayerNorm default eps
# > v5e (16 MiB) / v6e, v7x (32 MiB) scoped defaults, < v7x's 64 MiB physical VMEM.
VMEM_LIMIT_BYTES = 48 * 1024 * 1024


# ----------------------------------------------------------------------------
# Shared helpers
# ----------------------------------------------------------------------------

def _layernorm(z, gamma, beta):
    """One-pass LayerNorm over the last axis (f32 math): var = E[z^2] - mean^2."""
    mean = jnp.mean(z, axis=-1, keepdims=True)
    msq = jnp.mean(z * z, axis=-1, keepdims=True)
    var = msq - mean * mean
    return (z - mean) * jax.lax.rsqrt(var + LN_EPS) * gamma + beta


def position_encoding(seq_len, dim_model):
    # Matches the PyTorch position_encoding(): sin for even dims, cos for odd dims.
    pos = jnp.arange(seq_len, dtype=jnp.float32).reshape(1, -1, 1)
    dim = jnp.arange(dim_model, dtype=jnp.float32).reshape(1, 1, -1)
    phase = pos / jnp.power(10000.0, dim / dim_model)
    return jnp.where(dim.astype(jnp.int32) % 2 == 0, jnp.sin(phase), jnp.cos(phase))


# ----------------------------------------------------------------------------
# Fused encoder-layer kernel
# ----------------------------------------------------------------------------

def _encoder_layer_kernel(*refs, num_heads, dim_k, has_pe):
    """One full TransformerEncoderLayer on a [bt, S, D] activation tile.

    out = LN2(h + FFN(h)),  h = LN1(x + MHA(x, x, x)),  x = input (+ PE, layer 0).
    Dropout is identity (eval mode).  Matmuls in bf16 on the MXU with f32
    accumulation; softmax / LayerNorm epilogues in f32.
    """
    if has_pe:
        (x_ref, pe_ref, wqkv_ref, bqkv_ref, wo_ref, bo_ref, g1_ref, be1_ref,
         w1_ref, bf1_ref, w2_ref, bf2_ref, g2_ref, be2_ref, o_ref) = refs
    else:
        (x_ref, wqkv_ref, bqkv_ref, wo_ref, bo_ref, g1_ref, be1_ref,
         w1_ref, bf1_ref, w2_ref, bf2_ref, g2_ref, be2_ref, o_ref) = refs
        pe_ref = None

    bt, S, D = x_ref.shape
    H, dk = num_heads, dim_k
    hk = H * dk

    x3 = x_ref[...].astype(jnp.float32)                 # [bt, S, D]
    if pe_ref is not None:
        x3 = x3 + pe_ref[...]                           # fused PE add (layer 0 only)
    x = x3.reshape(bt * S, D)                           # f32 residual stream
    xb = x.astype(jnp.bfloat16)

    # ---- attention sub-layer -------------------------------------------------
    # One wide QKV projection matmul; 1/sqrt(dk) is pre-folded into the Q columns
    # (and Q bias) at init, so no per-score scaling is needed.
    qkv = (jnp.dot(xb, wqkv_ref[...], preferred_element_type=jnp.float32)
           + bqkv_ref[...])                             # [bt*S, 3*hk] f32
    q, k, v = qkv[:, :hk], qkv[:, hk:2 * hk], qkv[:, 2 * hk:]

    # Per-(batch-row, head) attention; static unroll, 2-D MXU ops only.
    # TODO(synk): for long sequences / larger dk, switch to a head-major
    # [H, S, dk] layout (pltpu.einshape) with head-batched einsums and
    # flash-style query tiling; the dk-wide lane slices below are XLU relayouts.
    ctx_rows = []
    for j in range(bt):
        rows = slice(j * S, (j + 1) * S)
        ctx_h = []
        for h in range(H):
            cols = slice(h * dk, (h + 1) * dk)
            qh = q[rows, cols].astype(jnp.bfloat16)     # [S, dk]
            kh = k[rows, cols].astype(jnp.bfloat16)
            vh = v[rows, cols].astype(jnp.bfloat16)
            s = jnp.einsum("qd,kd->qk", qh, kh,
                           preferred_element_type=jnp.float32)       # [S, S]
            s = s - jnp.max(s, axis=-1, keepdims=True)
            e = jnp.exp(s)
            # Exact EUP reciprocal (free slot) instead of a VALU divide.
            p = e * pl.reciprocal(jnp.sum(e, axis=-1, keepdims=True))
            ctx_h.append(jnp.dot(p.astype(jnp.bfloat16), vh,
                                 preferred_element_type=jnp.float32))  # [S, dk]
        ctx_rows.append(jnp.concatenate(ctx_h, axis=-1))               # [S, hk]
    concat = ctx_rows[0] if bt == 1 else jnp.concatenate(ctx_rows, axis=0)

    attn = (jnp.dot(concat.astype(jnp.bfloat16), wo_ref[...],
                    preferred_element_type=jnp.float32) + bo_ref[...])  # [bt*S, D]
    h1 = _layernorm(x + attn, g1_ref[...], be1_ref[...])                # f32

    # ---- feed-forward sub-layer ----------------------------------------------
    ff = (jnp.dot(h1.astype(jnp.bfloat16), w1_ref[...],
                  preferred_element_type=jnp.float32) + bf1_ref[...])   # [bt*S, F]
    ff = jnp.maximum(ff, 0.0)
    y = (jnp.dot(ff.astype(jnp.bfloat16), w2_ref[...],
                 preferred_element_type=jnp.float32) + bf2_ref[...])    # [bt*S, D]
    out = _layernorm(h1 + y, g2_ref[...], be2_ref[...])

    o_ref[...] = out.reshape(bt, S, D).astype(o_ref.dtype)


# ----------------------------------------------------------------------------
# pallas_call wrapper
# ----------------------------------------------------------------------------

def _const_spec(shape):
    """Grid-invariant input: constant index_map + single-buffered (halves the
    VMEM footprint of weights that never change across grid steps)."""
    return pl.BlockSpec(shape, lambda b: (0,) * len(shape),
                        pipeline_mode=pl.Buffered(1))


def _pick_batch_tile(batch, seq):
    """Batch rows per grid step: aim for >=128 MXU rows (bt*S) in the projection
    and FFN matmuls while keeping >=2 grid steps so the pipeline can overlap."""
    target = max(1, 128 // max(seq, 1))
    best = 1
    for bt in range(1, batch + 1):
        if batch % bt == 0 and bt <= target and batch // bt >= 2:
            best = bt
    return best


def encoder_layer(lp, x, pe=None):
    B, S, D = x.shape
    H, dk = lp["num_heads"], lp["dim_k"]
    hk = H * dk
    Fd = lp["w1"].shape[1]
    bt = _pick_batch_tile(B, S)

    kernel = functools.partial(_encoder_layer_kernel, num_heads=H, dim_k=dk,
                               has_pe=pe is not None)

    in_specs = [pl.BlockSpec((bt, S, D), lambda b: (b, 0, 0))]
    args = [x]
    if pe is not None:
        in_specs.append(_const_spec((S, D)))
        args.append(pe)
    weight_shapes = [(D, 3 * hk), (1, 3 * hk), (hk, D), (1, D), (1, D), (1, D),
                     (D, Fd), (1, Fd), (Fd, D), (1, D), (1, D), (1, D)]
    in_specs += [_const_spec(s) for s in weight_shapes]
    args += [lp["w_qkv"], lp["b_qkv"], lp["wo"], lp["bo"], lp["ln1_g"], lp["ln1_b"],
             lp["w1"], lp["b1"], lp["w2"], lp["b2"], lp["ln2_g"], lp["ln2_b"]]

    return pl.pallas_call(
        kernel,
        grid=(B // bt,),
        out_shape=jax.ShapeDtypeStruct((B, S, D), jnp.bfloat16),
        in_specs=in_specs,
        out_specs=pl.BlockSpec((bt, S, D), lambda b: (b, 0, 0)),
        compiler_params=pltpu.CompilerParams(
            dimension_semantics=("parallel",),
            vmem_limit_bytes=VMEM_LIMIT_BYTES),
    )(*args)


def transformer_encoder(params, src):
    """Eval-mode forward of the PyTorch TransformerEncoder (dropout = identity)."""
    B, S, D = src.shape
    pe = position_encoding(S, D)[0]          # [S, D]; added inside layer 0's kernel
    # TODO(synk): the reference forward also calls plt.imshow(pe[...]) (a plotting
    # side effect); it does not affect the returned tensor and is omitted here.
    x = src.astype(jnp.bfloat16)             # bf16 residual stream between layers
    for li, lp in enumerate(params["layers"]):
        x = encoder_layer(lp, x, pe if li == 0 else None)
    return x.astype(jnp.float32)


# ----------------------------------------------------------------------------
# Deterministic parameter init (shapes follow the nn.Module __init__)
# ----------------------------------------------------------------------------

def init_params(key, num_layers, dim_model, num_heads, dim_feedforward):
    dk = dim_model // num_heads
    hk = num_heads * dk
    inv_scale = 1.0 / math.sqrt(dk)

    def nrm(k, shape, scale=0.05):
        return scale * jax.random.normal(k, shape, dtype=jnp.float32)

    layers = []
    keys = jax.random.split(key, num_layers)
    for li in range(num_layers):
        ks = jax.random.split(keys[li], 12)
        # Per-head q/k/v Linear weights stacked column-wise as [q | k | v] (each hk
        # wide, head-major within each region).  1/sqrt(dk) is folded into the Q
        # weights AND Q bias so the kernel never scales the [S, S] score matrix.
        wq = nrm(ks[0], (dim_model, hk)) * inv_scale
        wk = nrm(ks[1], (dim_model, hk))
        wv = nrm(ks[2], (dim_model, hk))
        bq = nrm(ks[3], (1, hk)) * inv_scale
        bk = nrm(ks[4], (1, hk))
        bv = nrm(ks[5], (1, hk))
        layers.append({
            "num_heads": num_heads,
            "dim_k": dk,
            "w_qkv": jnp.concatenate([wq, wk, wv], axis=1).astype(jnp.bfloat16),
            "b_qkv": jnp.concatenate([bq, bk, bv], axis=1),
            "wo": nrm(ks[6], (hk, dim_model)).astype(jnp.bfloat16),
            "bo": nrm(ks[7], (1, dim_model)),
            "ln1_g": jnp.ones((1, dim_model), jnp.float32),
            "ln1_b": jnp.zeros((1, dim_model), jnp.float32),
            "w1": nrm(ks[8], (dim_model, dim_feedforward)).astype(jnp.bfloat16),
            "b1": nrm(ks[9], (1, dim_feedforward)),
            "w2": nrm(ks[10], (dim_feedforward, dim_model)).astype(jnp.bfloat16),
            "b2": nrm(ks[11], (1, dim_model)),
            "ln2_g": jnp.ones((1, dim_model), jnp.float32),
            "ln2_b": jnp.zeros((1, dim_model), jnp.float32),
        })
    return {"layers": layers}


# ----------------------------------------------------------------------------
# Pure-JAX reference (same bf16-matmul / f32-epilogue / bf16-boundary policy)
# ----------------------------------------------------------------------------

def reference_encoder(params, src):
    B, S, D = src.shape
    pe = position_encoding(S, D)                          # [1, S, D]
    x = src.astype(jnp.bfloat16).astype(jnp.float32) + pe
    for lp in params["layers"]:
        H, dk = lp["num_heads"], lp["dim_k"]
        hk = H * dk
        qkv = jnp.einsum("bsd,df->bsf", x.astype(jnp.bfloat16), lp["w_qkv"],
                         preferred_element_type=jnp.float32) + lp["b_qkv"]
        q, k, v = qkv[..., :hk], qkv[..., hk:2 * hk], qkv[..., 2 * hk:]
        ctx = []
        for h in range(H):
            sl = slice(h * dk, (h + 1) * dk)
            qh, kh, vh = (t[..., sl].astype(jnp.bfloat16) for t in (q, k, v))
            s = jnp.einsum("bqd,bkd->bqk", qh, kh,
                           preferred_element_type=jnp.float32)
            p = jax.nn.softmax(s, axis=-1)                # scale pre-folded into W_q
            ctx.append(jnp.einsum("bqk,bkd->bqd", p.astype(jnp.bfloat16), vh,
                                  preferred_element_type=jnp.float32))
        concat = jnp.concatenate(ctx, axis=-1)
        attn = jnp.einsum("bsf,fd->bsd", concat.astype(jnp.bfloat16), lp["wo"],
                          preferred_element_type=jnp.float32) + lp["bo"]
        x = _layernorm(x + attn, lp["ln1_g"], lp["ln1_b"])
        h1 = jnp.maximum(
            jnp.einsum("bsd,df->bsf", x.astype(jnp.bfloat16), lp["w1"],
                       preferred_element_type=jnp.float32) + lp["b1"], 0.0)
        y = jnp.einsum("bsf,fd->bsd", h1.astype(jnp.bfloat16), lp["w2"],
                       preferred_element_type=jnp.float32) + lp["b2"]
        x = _layernorm(x + y, lp["ln2_g"], lp["ln2_b"])
        x = x.astype(jnp.bfloat16).astype(jnp.float32)    # mirror bf16 layer boundary
    return x


# ----------------------------------------------------------------------------
# Main
# ----------------------------------------------------------------------------

if __name__ == "__main__":
    # Small shapes consistent with the module's forward (src is [B, S, D]).
    # D is a multiple of 128 so every kernel tile is lane-dense on the TPU vregs.
    B, S, D = 2, 16, 128
    NUM_HEADS, DIM_FF, NUM_LAYERS = 4, 256, 2

    key = jax.random.PRNGKey(0)
    k_src, k_par = jax.random.split(key)
    src = jax.random.uniform(k_src, (B, S, D), dtype=jnp.float32)
    params = init_params(k_par, NUM_LAYERS, D, NUM_HEADS, DIM_FF)

    out = jax.block_until_ready(transformer_encoder(params, src))

    assert out.shape == (B, S, D)
    assert bool(jnp.all(jnp.isfinite(out)))

    # Sanity check against a pure-JAX reference using the same precision policy
    # (bf16 MXU matmuls, f32 epilogues, bf16 inter-layer activations).
    ref = jax.block_until_ready(reference_encoder(params, src))
    max_err = float(jnp.max(jnp.abs(out - ref)))
    assert max_err < 0.1, max_err

    print("KERNEL_OK")
</pallas_src>

<mosaic_0001>
module attributes {stable_mosaic.version = 11 : i64} {
  func.func @_encoder_layer_kernel(%arg0: i32, %arg1: memref<1x16x128xbf16, #tpu.memory_space<vmem>>, %arg2: memref<16x128xf32, #tpu.memory_space<vmem>>, %arg3: memref<128x384xbf16, #tpu.memory_space<vmem>>, %arg4: memref<1x384xf32, #tpu.memory_space<vmem>>, %arg5: memref<128x128xbf16, #tpu.memory_space<vmem>>, %arg6: memref<1x128xf32, #tpu.memory_space<vmem>>, %arg7: memref<1x128xf32, #tpu.memory_space<vmem>>, %arg8: memref<1x128xf32, #tpu.memory_space<vmem>>, %arg9: memref<128x256xbf16, #tpu.memory_space<vmem>>, %arg10: memref<1x256xf32, #tpu.memory_space<vmem>>, %arg11: memref<256x128xbf16, #tpu.memory_space<vmem>>, %arg12: memref<1x128xf32, #tpu.memory_space<vmem>>, %arg13: memref<1x128xf32, #tpu.memory_space<vmem>>, %arg14: memref<1x128xf32, #tpu.memory_space<vmem>>, %arg15: memref<1x16x128xbf16, #tpu.memory_space<vmem>>) attributes {dimension_semantics = [#tpu.dimension_semantics<parallel>], iteration_bounds = array<i64: 2>, scalar_prefetch = 0 : i64, scratch_operands = 0 : i64, tpu.core_type = #tpu.core_type<tc>, window_params = [{transform_indices = @transform_0, window_bounds = array<i64: 1, 16, 128>}, {pipeline_mode = #tpu.pipeline_mode<synchronous>, transform_indices = @transform_1, window_bounds = array<i64: 16, 128>}, {pipeline_mode = #tpu.pipeline_mode<synchronous>, transform_indices = @transform_2, window_bounds = array<i64: 128, 384>}, {pipeline_mode = #tpu.pipeline_mode<synchronous>, transform_indices = @transform_3, window_bounds = array<i64: 1, 384>}, {pipeline_mode = #tpu.pipeline_mode<synchronous>, transform_indices = @transform_4, window_bounds = array<i64: 128, 128>}, {pipeline_mode = #tpu.pipeline_mode<synchronous>, transform_indices = @transform_5, window_bounds = array<i64: 1, 128>}, {pipeline_mode = #tpu.pipeline_mode<synchronous>, transform_indices = @transform_6, window_bounds = array<i64: 1, 128>}, {pipeline_mode = #tpu.pipeline_mode<synchronous>, transform_indices = @transform_7, window_bounds = array<i64: 1, 128>}, {pipeline_mode = #tpu.pipeline_mode<synchronous>, transform_indices = @transform_8, window_bounds = array<i64: 128, 256>}, {pipeline_mode = #tpu.pipeline_mode<synchronous>, transform_indices = @transform_9, window_bounds = array<i64: 1, 256>}, {pipeline_mode = #tpu.pipeline_mode<synchronous>, transform_indices = @transform_10, window_bounds = array<i64: 256, 128>}, {pipeline_mode = #tpu.pipeline_mode<synchronous>, transform_indices = @transform_11, window_bounds = array<i64: 1, 128>}, {pipeline_mode = #tpu.pipeline_mode<synchronous>, transform_indices = @transform_12, window_bounds = array<i64: 1, 128>}, {pipeline_mode = #tpu.pipeline_mode<synchronous>, transform_indices = @transform_13, window_bounds = array<i64: 1, 128>}, {transform_indices = @transform_14, window_bounds = array<i64: 1, 16, 128>}]} {
    %c0 = arith.constant 0 : index
    %c0_0 = arith.constant 0 : index
    %c0_1 = arith.constant 0 : index
    %0 = vector.load %arg1[%c0, %c0_0, %c0_1] : memref<1x16x128xbf16, #tpu.memory_space<vmem>>, vector<1x16x128xbf16>
    %1 = arith.extf %0 : vector<1x16x128xbf16> to vector<1x16x128xf32>
    %c0_2 = arith.constant 0 : index
    %c0_3 = arith.constant 0 : index
    %2 = vector.load %arg2[%c0_2, %c0_3] : memref<16x128xf32, #tpu.memory_space<vmem>>, vector<16x128xf32>
    %3 = vector.shape_cast %2 : vector<16x128xf32> to vector<1x16x128xf32>
    %4 = arith.addf %1, %3 : vector<1x16x128xf32>
    %5 = vector.shape_cast %4 : vector<1x16x128xf32> to vector<16x128xf32>
    %6 = arith.truncf %5 : vector<16x128xf32> to vector<16x128xbf16>
    %c0_4 = arith.constant 0 : index
    %c0_5 = arith.constant 0 : index
    %7 = vector.load %arg3[%c0_4, %c0_5] : memref<128x384xbf16, #tpu.memory_space<vmem>>, vector<128x384xbf16>
    %cst = arith.constant dense<0.000000e+00> : vector<16x384xf32>
    %8 = tpu.matmul %6, %7, %cst {dimension_numbers = #tpu.dot_dimension_numbers<[1], [0], [0], [1], [0, 0, 1, 1], [], []>} : vector<16x128xbf16>, vector<128x384xbf16>, vector<16x384xf32> -> vector<16x384xf32>
    %c0_6 = arith.constant 0 : index
    %c0_7 = arith.constant 0 : index
    %9 = vector.load %arg4[%c0_6, %c0_7] : memref<1x384xf32, #tpu.memory_space<vmem>>, vector<1x384xf32>
    %10 = vector.broadcast %9 : vector<1x384xf32> to vector<16x384xf32>
    %11 = arith.addf %8, %10 : vector<16x384xf32>
    %12 = vector.extract_strided_slice %11 {offsets = [0, 0], sizes = [16, 128], strides = [1, 1]} : vector<16x384xf32> to vector<16x128xf32>
    %13 = vector.extract_strided_slice %11 {offsets = [0, 128], sizes = [16, 128], strides = [1, 1]} : vector<16x384xf32> to vector<16x128xf32>
    %14 = vector.extract_strided_slice %11 {offsets = [0, 256], sizes = [16, 128], strides = [1, 1]} : vector<16x384xf32> to vector<16x128xf32>
    %15 = vector.extract_strided_slice %12 {offsets = [0, 0], sizes = [16, 32], strides = [1, 1]} : vector<16x128xf32> to vector<16x32xf32>
    %16 = arith.truncf %15 : vector<16x32xf32> to vector<16x32xbf16>
    %17 = vector.extract_strided_slice %13 {offsets = [0, 0], sizes = [16, 32], strides = [1, 1]} : vector<16x128xf32> to vector<16x32xf32>
    %18 = arith.truncf %17 : vector<16x32xf32> to vector<16x32xbf16>
    %19 = vector.extract_strided_slice %14 {offsets = [0, 0], sizes = [16, 32], strides = [1, 1]} : vector<16x128xf32> to vector<16x32xf32>
    %20 = arith.truncf %19 : vector<16x32xf32> to vector<16x32xbf16>
    "tpu.trace_start"() <{level = 10 : i32, message = "qd,kd->qk"}> : () -> ()
    %cst_8 = arith.constant dense<0.000000e+00> : vector<16x16xf32>
    %21 = tpu.matmul %16, %18, %cst_8 {dimension_numbers = #tpu.dot_dimension_numbers<[1], [1], [0], [0], [0, 0, 1, 0], [], []>} : vector<16x32xbf16>, vector<16x32xbf16>, vector<16x16xf32> -> vector<16x16xf32>
    "tpu.trace_stop"() : () -> ()
    %cst_9 = arith.constant dense<0xFF800000> : vector<16xf32>
    %22 = vector.multi_reduction <maximumf>, %21, %cst_9 [1] : vector<16x16xf32> to vector<16xf32>
    %23 = vector.shape_cast %22 : vector<16xf32> to vector<16x1xf32>
    %24 = vector.broadcast %23 : vector<16x1xf32> to vector<16x16xf32>
    %25 = arith.subf %21, %24 : vector<16x16xf32>
    %26 = math.exp %25 : vector<16x16xf32>
    %cst_10 = arith.constant dense<0.000000e+00> : vector<16xf32>
    %27 = vector.multi_reduction <add>, %26, %cst_10 [1] : vector<16x16xf32> to vector<16xf32>
    %28 = vector.shape_cast %27 : vector<16xf32> to vector<16x1xf32>
    %29 = tpu.reciprocal %28 : vector<16x1xf32> -> vector<16x1xf32>
    %30 = vector.broadcast %29 : vector<16x1xf32> to vector<16x16xf32>
    %31 = arith.mulf %26, %30 : vector<16x16xf32>
    %32 = arith.truncf %31 : vector<16x16xf32> to vector<16x16xbf16>
    %cst_11 = arith.constant dense<0.000000e+00> : vector<16x32xf32>
    %33 = tpu.matmul %32, %20, %cst_11 {dimension_numbers = #tpu.dot_dimension_numbers<[1], [0], [0], [1], [0, 0, 1, 1], [], []>} : vector<16x16xbf16>, vector<16x32xbf16>, vector<16x32xf32> -> vector<16x32xf32>
    %34 = vector.extract_strided_slice %12 {offsets = [0, 32], sizes = [16, 32], strides = [1, 1]} : vector<16x128xf32> to vector<16x32xf32>
    %35 = arith.truncf %34 : vector<16x32xf32> to vector<16x32xbf16>
    %36 = vector.extract_strided_slice %13 {offsets = [0, 32], sizes = [16, 32], strides = [1, 1]} : vector<16x128xf32> to vector<16x32xf32>
    %37 = arith.truncf %36 : vector<16x32xf32> to vector<16x32xbf16>
    %38 = vector.extract_strided_slice %14 {offsets = [0, 32], sizes = [16, 32], strides = [1, 1]} : vector<16x128xf32> to vector<16x32xf32>
    %39 = arith.truncf %38 : vector<16x32xf32> to vector<16x32xbf16>
    "tpu.trace_start"() <{level = 10 : i32, message = "qd,kd->qk"}> : () -> ()
    %cst_12 = arith.constant dense<0.000000e+00> : vector<16x16xf32>
    %40 = tpu.matmul %35, %37, %cst_12 {dimension_numbers = #tpu.dot_dimension_numbers<[1], [1], [0], [0], [0, 0, 1, 0], [], []>} : vector<16x32xbf16>, vector<16x32xbf16>, vector<16x16xf32> -> vector<16x16xf32>
    "tpu.trace_stop"() : () -> ()
    %cst_13 = arith.constant dense<0xFF800000> : vector<16xf32>
    %41 = vector.multi_reduction <maximumf>, %40, %cst_13 [1] : vector<16x16xf32> to vector<16xf32>
    %42 = vector.shape_cast %41 : vector<16xf32> to vector<16x1xf32>
    %43 = vector.broadcast %42 : vector<16x1xf32> to vector<16x16xf32>
    %44 = arith.subf %40, %43 : vector<16x16xf32>
    %45 = math.exp %44 : vector<16x16xf32>
    %cst_14 = arith.constant dense<0.000000e+00> : vector<16xf32>
    %46 = vector.multi_reduction <add>, %45, %cst_14 [1] : vector<16x16xf32> to vector<16xf32>
    %47 = vector.shape_cast %46 : vector<16xf32> to vector<16x1xf32>
    %48 = tpu.reciprocal %47 : vector<16x1xf32> -> vector<16x1xf32>
    %49 = vector.broadcast %48 : vector<16x1xf32> to vector<16x16xf32>
    %50 = arith.mulf %45, %49 : vector<16x16xf32>
    %51 = arith.truncf %50 : vector<16x16xf32> to vector<16x16xbf16>
    %cst_15 = arith.constant dense<0.000000e+00> : vector<16x32xf32>
    %52 = tpu.matmul %51, %39, %cst_15 {dimension_numbers = #tpu.dot_dimension_numbers<[1], [0], [0], [1], [0, 0, 1, 1], [], []>} : vector<16x16xbf16>, vector<16x32xbf16>, vector<16x32xf32> -> vector<16x32xf32>
    %53 = vector.extract_strided_slice %12 {offsets = [0, 64], sizes = [16, 32], strides = [1, 1]} : vector<16x128xf32> to vector<16x32xf32>
    %54 = arith.truncf %53 : vector<16x32xf32> to vector<16x32xbf16>
    %55 = vector.extract_strided_slice %13 {offsets = [0, 64], sizes = [16, 32], strides = [1, 1]} : vector<16x128xf32> to vector<16x32xf32>
    %56 = arith.truncf %55 : vector<16x32xf32> to vector<16x32xbf16>
    %57 = vector.extract_strided_slice %14 {offsets = [0, 64], sizes = [16, 32], strides = [1, 1]} : vector<16x128xf32> to vector<16x32xf32>
    %58 = arith.truncf %57 : vector<16x32xf32> to vector<16x32xbf16>
    "tpu.trace_start"() <{level = 10 : i32, message = "qd,kd->qk"}> : () -> ()
    %cst_16 = arith.constant dense<0.000000e+00> : vector<16x16xf32>
    %59 = tpu.matmul %54, %56, %cst_16 {dimension_numbers = #tpu.dot_dimension_numbers<[1], [1], [0], [0], [0, 0, 1, 0], [], []>} : vector<16x32xbf16>, vector<16x32xbf16>, vector<16x16xf32> -> vector<16x16xf32>
    "tpu.trace_stop"() : () -> ()
    %cst_17 = arith.constant dense<0xFF800000> : vector<16xf32>
    %60 = vector.multi_reduction <maximumf>, %59, %cst_17 [1] : vector<16x16xf32> to vector<16xf32>
    %61 = vector.shape_cast %60 : vector<16xf32> to vector<16x1xf32>
    %62 = vector.broadcast %61 : vector<16x1xf32> to vector<16x16xf32>
    %63 = arith.subf %59, %62 : vector<16x16xf32>
    %64 = math.exp %63 : vector<16x16xf32>
    %cst_18 = arith.constant dense<0.000000e+00> : vector<16xf32>
    %65 = vector.multi_reduction <add>, %64, %cst_18 [1] : vector<16x16xf32> to vector<16xf32>
    %66 = vector.shape_cast %65 : vector<16xf32> to vector<16x1xf32>
    %67 = tpu.reciprocal %66 : vector<16x1xf32> -> vector<16x1xf32>
    %68 = vector.broadcast %67 : vector<16x1xf32> to vector<16x16xf32>
    %69 = arith.mulf %64, %68 : vector<16x16xf32>
    %70 = arith.truncf %69 : vector<16x16xf32> to vector<16x16xbf16>
    %cst_19 = arith.constant dense<0.000000e+00> : vector<16x32xf32>
    %71 = tpu.matmul %70, %58, %cst_19 {dimension_numbers = #tpu.dot_dimension_numbers<[1], [0], [0], [1], [0, 0, 1, 1], [], []>} : vector<16x16xbf16>, vector<16x32xbf16>, vector<16x32xf32> -> vector<16x32xf32>
    %72 = vector.extract_strided_slice %12 {offsets = [0, 96], sizes = [16, 32], strides = [1, 1]} : vector<16x128xf32> to vector<16x32xf32>
    %73 = arith.truncf %72 : vector<16x32xf32> to vector<16x32xbf16>
    %74 = vector.extract_strided_slice %13 {offsets = [0, 96], sizes = [16, 32], strides = [1, 1]} : vector<16x128xf32> to vector<16x32xf32>
    %75 = arith.truncf %74 : vector<16x32xf32> to vector<16x32xbf16>
    %76 = vector.extract_strided_slice %14 {offsets = [0, 96], sizes = [16, 32], strides = [1, 1]} : vector<16x128xf32> to vector<16x32xf32>
    %77 = arith.truncf %76 : vector<16x32xf32> to vector<16x32xbf16>
    "tpu.trace_start"() <{level = 10 : i32, message = "qd,kd->qk"}> : () -> ()
    %cst_20 = arith.constant dense<0.000000e+00> : vector<16x16xf32>
    %78 = tpu.matmul %73, %75, %cst_20 {dimension_numbers = #tpu.dot_dimension_numbers<[1], [1], [0], [0], [0, 0, 1, 0], [], []>} : vector<16x32xbf16>, vector<16x32xbf16>, vector<16x16xf32> -> vector<16x16xf32>
    "tpu.trace_stop"() : () -> ()
    %cst_21 = arith.constant dense<0xFF800000> : vector<16xf32>
    %79 = vector.multi_reduction <maximumf>, %78, %cst_21 [1] : vector<16x16xf32> to vector<16xf32>
    %80 = vector.shape_cast %79 : vector<16xf32> to vector<16x1xf32>
    %81 = vector.broadcast %80 : vector<16x1xf32> to vector<16x16xf32>
    %82 = arith.subf %78, %81 : vector<16x16xf32>
    %83 = math.exp %82 : vector<16x16xf32>
    %cst_22 = arith.constant dense<0.000000e+00> : vector<16xf32>
    %84 = vector.multi_reduction <add>, %83, %cst_22 [1] : vector<16x16xf32> to vector<16xf32>
    %85 = vector.shape_cast %84 : vector<16xf32> to vector<16x1xf32>
    %86 = tpu.reciprocal %85 : vector<16x1xf32> -> vector<16x1xf32>
    %87 = vector.broadcast %86 : vector<16x1xf32> to vector<16x16xf32>
    %88 = arith.mulf %83, %87 : vector<16x16xf32>
    %89 = arith.truncf %88 : vector<16x16xf32> to vector<16x16xbf16>
    %cst_23 = arith.constant dense<0.000000e+00> : vector<16x32xf32>
    %90 = tpu.matmul %89, %77, %cst_23 {dimension_numbers = #tpu.dot_dimension_numbers<[1], [0], [0], [1], [0, 0, 1, 1], [], []>} : vector<16x16xbf16>, vector<16x32xbf16>, vector<16x32xf32> -> vector<16x32xf32>
    %91 = tpu.concatenate %33, %52, %71, %90 in 1 : vector<16x32xf32>, vector<16x32xf32>, vector<16x32xf32>, vector<16x32xf32> -> vector<16x128xf32>
    %92 = arith.truncf %91 : vector<16x128xf32> to vector<16x128xbf16>
    %c0_24 = arith.constant 0 : index
    %c0_25 = arith.constant 0 : index
    %93 = vector.load %arg5[%c0_24, %c0_25] : memref<128x128xbf16, #tpu.memory_space<vmem>>, vector<128x128xbf16>
    %cst_26 = arith.constant dense<0.000000e+00> : vector<16x128xf32>
    %94 = tpu.matmul %92, %93, %cst_26 {dimension_numbers = #tpu.dot_dimension_numbers<[1], [0], [0], [1], [0, 0, 1, 1], [], []>} : vector<16x128xbf16>, vector<128x128xbf16>, vector<16x128xf32> -> vector<16x128xf32>
    %c0_27 = arith.constant 0 : index
    %c0_28 = arith.constant 0 : index
    %95 = vector.load %arg6[%c0_27, %c0_28] : memref<1x128xf32, #tpu.memory_space<vmem>>, vector<1x128xf32>
    %96 = vector.broadcast %95 : vector<1x128xf32> to vector<16x128xf32>
    %97 = arith.addf %94, %96 : vector<16x128xf32>
    %98 = arith.addf %5, %97 : vector<16x128xf32>
    %c0_29 = arith.constant 0 : index
    %c0_30 = arith.constant 0 : index
    %99 = vector.load %arg7[%c0_29, %c0_30] : memref<1x128xf32, #tpu.memory_space<vmem>>, vector<1x128xf32>
    %c0_31 = arith.constant 0 : index
    %c0_32 = arith.constant 0 : index
    %100 = vector.load %arg8[%c0_31, %c0_32] : memref<1x128xf32, #tpu.memory_space<vmem>>, vector<1x128xf32>
    %cst_33 = arith.constant dense<0.000000e+00> : vector<16xf32>
    %101 = vector.multi_reduction <add>, %98, %cst_33 [1] : vector<16x128xf32> to vector<16xf32>
    %102 = vector.shape_cast %101 : vector<16xf32> to vector<16x1xf32>
    %cst_34 = arith.constant 1.280000e+02 : f32
    %103 = vector.broadcast %cst_34 : f32 to vector<16x1xf32>
    %104 = arith.divf %102, %103 : vector<16x1xf32>
    %105 = arith.mulf %98, %98 : vector<16x128xf32>
    %cst_35 = arith.constant dense<0.000000e+00> : vector<16xf32>
    %106 = vector.multi_reduction <add>, %105, %cst_35 [1] : vector<16x128xf32> to vector<16xf32>
    %107 = vector.shape_cast %106 : vector<16xf32> to vector<16x1xf32>
    %cst_36 = arith.constant 1.280000e+02 : f32
    %108 = vector.broadcast %cst_36 : f32 to vector<16x1xf32>
    %109 = arith.divf %107, %108 : vector<16x1xf32>
    %110 = arith.mulf %104, %104 : vector<16x1xf32>
    %111 = arith.subf %109, %110 : vector<16x1xf32>
    %112 = vector.broadcast %104 : vector<16x1xf32> to vector<16x128xf32>
    %113 = arith.subf %98, %112 : vector<16x128xf32>
    %cst_37 = arith.constant 9.99999974E-6 : f32
    %114 = vector.broadcast %cst_37 : f32 to vector<16x1xf32>
    %115 = arith.addf %111, %114 : vector<16x1xf32>
    %116 = math.rsqrt %115 : vector<16x1xf32>
    %117 = vector.broadcast %116 : vector<16x1xf32> to vector<16x128xf32>
    %118 = arith.mulf %113, %117 : vector<16x128xf32>
    %119 = vector.broadcast %99 : vector<1x128xf32> to vector<16x128xf32>
    %120 = arith.mulf %118, %119 : vector<16x128xf32>
    %121 = vector.broadcast %100 : vector<1x128xf32> to vector<16x128xf32>
    %122 = arith.addf %120, %121 : vector<16x128xf32>
    %123 = arith.truncf %122 : vector<16x128xf32> to vector<16x128xbf16>
    %c0_38 = arith.constant 0 : index
    %c0_39 = arith.constant 0 : index
    %124 = vector.load %arg9[%c0_38, %c0_39] : memref<128x256xbf16, #tpu.memory_space<vmem>>, vector<128x256xbf16>
    %cst_40 = arith.constant dense<0.000000e+00> : vector<16x256xf32>
    %125 = tpu.matmul %123, %124, %cst_40 {dimension_numbers = #tpu.dot_dimension_numbers<[1], [0], [0], [1], [0, 0, 1, 1], [], []>} : vector<16x128xbf16>, vector<128x256xbf16>, vector<16x256xf32> -> vector<16x256xf32>
    %c0_41 = arith.constant 0 : index
    %c0_42 = arith.constant 0 : index
    %126 = vector.load %arg10[%c0_41, %c0_42] : memref<1x256xf32, #tpu.memory_space<vmem>>, vector<1x256xf32>
    %127 = vector.broadcast %126 : vector<1x256xf32> to vector<16x256xf32>
    %128 = arith.addf %125, %127 : vector<16x256xf32>
    %cst_43 = arith.constant 0.000000e+00 : f32
    %129 = vector.broadcast %cst_43 : f32 to vector<16x256xf32>
    %130 = arith.maximumf %128, %129 : vector<16x256xf32>
    %131 = arith.truncf %130 : vector<16x256xf32> to vector<16x256xbf16>
    %c0_44 = arith.constant 0 : index
    %c0_45 = arith.constant 0 : index
    %132 = vector.load %arg11[%c0_44, %c0_45] : memref<256x128xbf16, #tpu.memory_space<vmem>>, vector<256x128xbf16>
    %cst_46 = arith.constant dense<0.000000e+00> : vector<16x128xf32>
    %133 = tpu.matmul %131, %132, %cst_46 {dimension_numbers = #tpu.dot_dimension_numbers<[1], [0], [0], [1], [0, 0, 1, 1], [], []>} : vector<16x256xbf16>, vector<256x128xbf16>, vector<16x128xf32> -> vector<16x128xf32>
    %c0_47 = arith.constant 0 : index
    %c0_48 = arith.constant 0 : index
    %134 = vector.load %arg12[%c0_47, %c0_48] : memref<1x128xf32, #tpu.memory_space<vmem>>, vector<1x128xf32>
    %135 = vector.broadcast %134 : vector<1x128xf32> to vector<16x128xf32>
    %136 = arith.addf %133, %135 : vector<16x128xf32>
    %137 = arith.addf %122, %136 : vector<16x128xf32>
    %c0_49 = arith.constant 0 : index
    %c0_50 = arith.constant 0 : index
    %138 = vector.load %arg13[%c0_49, %c0_50] : memref<1x128xf32, #tpu.memory_space<vmem>>, vector<1x128xf32>
    %c0_51 = arith.constant 0 : index
    %c0_52 = arith.constant 0 : index
    %139 = vector.load %arg14[%c0_51, %c0_52] : memref<1x128xf32, #tpu.memory_space<vmem>>, vector<1x128xf32>
    %cst_53 = arith.constant dense<0.000000e+00> : vector<16xf32>
    %140 = vector.multi_reduction <add>, %137, %cst_53 [1] : vector<16x128xf32> to vector<16xf32>
    %141 = vector.shape_cast %140 : vector<16xf32> to vector<16x1xf32>
    %cst_54 = arith.constant 1.280000e+02 : f32
    %142 = vector.broadcast %cst_54 : f32 to vector<16x1xf32>
    %143 = arith.divf %141, %142 : vector<16x1xf32>
    %144 = arith.mulf %137, %137 : vector<16x128xf32>
    %cst_55 = arith.constant dense<0.000000e+00> : vector<16xf32>
    %145 = vector.multi_reduction <add>, %144, %cst_55 [1] : vector<16x128xf32> to vector<16xf32>
    %146 = vector.shape_cast %145 : vector<16xf32> to vector<16x1xf32>
    %cst_56 = arith.constant 1.280000e+02 : f32
    %147 = vector.broadcast %cst_56 : f32 to vector<16x1xf32>
    %148 = arith.divf %146, %147 : vector<16x1xf32>
    %149 = arith.mulf %143, %143 : vector<16x1xf32>
    %150 = arith.subf %148, %149 : vector<16x1xf32>
    %151 = vector.broadcast %143 : vector<16x1xf32> to vector<16x128xf32>
    %152 = arith.subf %137, %151 : vector<16x128xf32>
    %cst_57 = arith.constant 9.99999974E-6 : f32
    %153 = vector.broadcast %cst_57 : f32 to vector<16x1xf32>
    %154 = arith.addf %150, %153 : vector<16x1xf32>
    %155 = math.rsqrt %154 : vector<16x1xf32>
    %156 = vector.broadcast %155 : vector<16x1xf32> to vector<16x128xf32>
    %157 = arith.mulf %152, %156 : vector<16x128xf32>
    %158 = vector.broadcast %138 : vector<1x128xf32> to vector<16x128xf32>
    %159 = arith.mulf %157, %158 : vector<16x128xf32>
    %160 = vector.broadcast %139 : vector<1x128xf32> to vector<16x128xf32>
    %161 = arith.addf %159, %160 : vector<16x128xf32>
    %162 = vector.shape_cast %161 : vector<16x128xf32> to vector<1x16x128xf32>
    %163 = arith.truncf %162 : vector<1x16x128xf32> to vector<1x16x128xbf16>
    %c0_58 = arith.constant 0 : index
    %c0_59 = arith.constant 0 : index
    %c0_60 = arith.constant 0 : index
    %164 = vector.load %arg15[%c0_58, %c0_59, %c0_60] : memref<1x16x128xbf16, #tpu.memory_space<vmem>>, vector<1x16x128xbf16>
    tpu.vector_store %arg15[%c0_58, %c0_59, %c0_60], %163 {strides = array<i32>} : memref<1x16x128xbf16, #tpu.memory_space<vmem>>, vector<1x16x128xbf16>,
    return
  }
  func.func @transform_0(%arg0: i32) -> (i32, i32, i32) {
    %c0_i32 = arith.constant 0 : i32
    %c0_i32_0 = arith.constant 0 : i32
    %c0_i32_1 = arith.constant 0 : i32
    return %arg0, %c0_i32, %c0_i32_0 : i32, i32, i32
  }
  func.func @transform_1(%arg0: i32) -> (i32, i32) {
    %c0_i32 = arith.constant 0 : i32
    %c0_i32_0 = arith.constant 0 : i32
    %c0_i32_1 = arith.constant 0 : i32
    return %c0_i32, %c0_i32_0 : i32, i32
  }
  func.func @transform_2(%arg0: i32) -> (i32, i32) {
    %c0_i32 = arith.constant 0 : i32
    %c0_i32_0 = arith.constant 0 : i32
    %c0_i32_1 = arith.constant 0 : i32
    return %c0_i32, %c0_i32_0 : i32, i32
  }
  func.func @transform_3(%arg0: i32) -> (i32, i32) {
    %c0_i32 = arith.constant 0 : i32
    %c0_i32_0 = arith.constant 0 : i32
    %c0_i32_1 = arith.constant 0 : i32
    return %c0_i32, %c0_i32_0 : i32, i32
  }
  func.func @transform_4(%arg0: i32) -> (i32, i32) {
    %c0_i32 = arith.constant 0 : i32
    %c0_i32_0 = arith.constant 0 : i32
    %c0_i32_1 = arith.constant 0 : i32
    return %c0_i32, %c0_i32_0 : i32, i32
  }
  func.func @transform_5(%arg0: i32) -> (i32, i32) {
    %c0_i32 = arith.constant 0 : i32
    %c0_i32_0 = arith.constant 0 : i32
    %c0_i32_1 = arith.constant 0 : i32
    return %c0_i32, %c0_i32_0 : i32, i32
  }
  func.func @transform_6(%arg0: i32) -> (i32, i32) {
    %c0_i32 = arith.constant 0 : i32
    %c0_i32_0 = arith.constant 0 : i32
    %c0_i32_1 = arith.constant 0 : i32
    return %c0_i32, %c0_i32_0 : i32, i32
  }
  func.func @transform_7(%arg0: i32) -> (i32, i32) {
    %c0_i32 = arith.constant 0 : i32
    %c0_i32_0 = arith.constant 0 : i32
    %c0_i32_1 = arith.constant 0 : i32
    return %c0_i32, %c0_i32_0 : i32, i32
  }
  func.func @transform_8(%arg0: i32) -> (i32, i32) {
    %c0_i32 = arith.constant 0 : i32
    %c0_i32_0 = arith.constant 0 : i32
    %c0_i32_1 = arith.constant 0 : i32
    return %c0_i32, %c0_i32_0 : i32, i32
  }
  func.func @transform_9(%arg0: i32) -> (i32, i32) {
    %c0_i32 = arith.constant 0 : i32
    %c0_i32_0 = arith.constant 0 : i32
    %c0_i32_1 = arith.constant 0 : i32
    return %c0_i32, %c0_i32_0 : i32, i32
  }
  func.func @transform_10(%arg0: i32) -> (i32, i32) {
    %c0_i32 = arith.constant 0 : i32
    %c0_i32_0 = arith.constant 0 : i32
    %c0_i32_1 = arith.constant 0 : i32
    return %c0_i32, %c0_i32_0 : i32, i32
  }
  func.func @transform_11(%arg0: i32) -> (i32, i32) {
    %c0_i32 = arith.constant 0 : i32
    %c0_i32_0 = arith.constant 0 : i32
    %c0_i32_1 = arith.constant 0 : i32
    return %c0_i32, %c0_i32_0 : i32, i32
  }
  func.func @transform_12(%arg0: i32) -> (i32, i32) {
    %c0_i32 = arith.constant 0 : i32
    %c0_i32_0 = arith.constant 0 : i32
    %c0_i32_1 = arith.constant 0 : i32
    return %c0_i32, %c0_i32_0 : i32, i32
  }
  func.func @transform_13(%arg0: i32) -> (i32, i32) {
    %c0_i32 = arith.constant 0 : i32
    %c0_i32_0 = arith.constant 0 : i32
    %c0_i32_1 = arith.constant 0 : i32
    return %c0_i32, %c0_i32_0 : i32, i32
  }
  func.func @transform_14(%arg0: i32) -> (i32, i32, i32) {
    %c0_i32 = arith.constant 0 : i32
    %c0_i32_0 = arith.constant 0 : i32
    %c0_i32_1 = arith.constant 0 : i32
    return %arg0, %c0_i32, %c0_i32_0 : i32, i32, i32
  }
}

</mosaic_0001>

<bundles_post_ra>
// kernel: tpu_custom_call.1
= control target key start
LH: loop header
LB: loop body
LE: loop exit
PB: predicated region body
PF: predicated region fallthrough
CT: control target
= control target key end

     0   :  { %s3277_s0 = inlined_call_operand.hbm [shape: bf16[2,16,128], index: 0, kind: input, shape index: {}]   ;;  %s3278_s1 = inlined_call_operand.hbm [shape: f32[16,128], index: 1, kind: input, shape index: {}]   ;;  %s3279_s2 = inlined_call_operand.hbm [shape: bf16[128,384], index: 2, kind: input, shape index: {}]   ;;  %s3280_s3 = inlined_call_operand.vmem [shape: f32[1,384], index: 3, kind: input, shape index: {}]   ;;  %s3281_s4 = inlined_call_operand.hbm [shape: bf16[128,128], index: 4, kind: input, shape index: {}]   ;;  %s3282_s5 = inlined_call_operand.vmem [shape: f32[1,128], index: 5, kind: input, shape index: {}]   ;;  %s3283_s6 = inlined_call_operand.vmem [shape: f32[1,128], index: 6, kind: input, shape index: {}]   ;;  %s3284_s7 = inlined_call_operand.vmem [shape: f32[1,128], index: 7, kind: input, shape index: {}]   ;;  %s3285_s8 = inlined_call_operand.hbm [shape: bf16[128,256], index: 8, kind: input, shape index: {}]   ;;  %s3286_s9 = inlined_call_operand.vmem [shape: f32[1,256], index: 9, kind: input, shape index: {}]   ;;  %s3287_s10 = inlined_call_operand.hbm [shape: bf16[256,128], index: 10, kind: input, shape index: {}]   ;;  %s3288_s11 = inlined_call_operand.vmem [shape: f32[1,128], index: 11, kind: input, shape index: {}]   ;;  %s3289_s12 = inlined_call_operand.vmem [shape: f32[1,128], index: 12, kind: input, shape index: {}]   ;;  %s3290_s13 = inlined_call_operand.vmem [shape: f32[1,128], index: 13, kind: input, shape index: {}]   ;;  %s3291_s14 = inlined_call_operand.hbm [shape: bf16[2,16,128], index: 14, kind: output, shape index: {}]  }
   0x1   :  { %3306 = sst [smem:[#allocation22_spill]] %s3278_s1 }
   0x2   :  { %3307 = sst [smem:[#allocation23_spill]] %s3279_s2 }
   0x3   :  { %3308 = sst [smem:[#allocation24_spill]] %s3281_s4 }
   0x4   :  { %3309 = sst [smem:[#allocation25_spill]] %s3285_s8 }
   0x5   :  { %3310 = sst [smem:[#allocation26_spill]] %s3287_s10 }
   0x6   :  { %3311 = sst [smem:[#allocation27_spill]] %s3290_s13 }
   0x7   :  { %3312 = sst [smem:[#allocation28_spill]] %s3291_s14 }
   0x8   :  { %19 = vsyncpa [#allocation3], 0 }
   0x9   :  { %21 = vsyncpa [#allocation3 + $0x1], 0 }
   0xa   :  { %22 = vsyncpa [#allocation6], 0 }
   0xb   :  { %23 = vsyncpa [#allocation9], 0 }
   0xc   :  { %24 = vsyncpa [#allocation12], 0 }
   0xd   :  { %25 = vsyncpa [#allocation4], 0 }
   0xe   :  { %27 = vsyncpa [#allocation4 + $0x1], 0  ;;  %s2869_s29 = smov 0   ;;  %s2871_s30 = smov 0  }
   0xf   :  { %s2873_s15 = smov 0   ;;  %s2875_s16 = smov 0  }
  0x10 LB: > { %3313 = sst [smem:[#allocation19_spill]] %s2768_s15  ;;  %s2774_s17 = smov [#allocation5]   ;;  %s2772_s16 = sphi %s2875_s16, %s3345_s16   ;;  %s2768_s15 = sphi %s2873_s15, %s3347_s15   ;;  %s2764_s30 = sphi %s2871_s30, %s3349_s30   ;;  %s2760_s29 = sphi %s2869_s29, %s3348_s29  }
  0x11   : > { %s375_s18 = sshll.u32 %s2774_s17, 4  ;;  %s2890_s19 = sadd.s32 4294967295, %s2772_s16   ;;  %s376_s18 = int_to_ptr.vmem [resolvable:$true] %s375_s18 }
  0x12   : > { %p2033_p0 = scmp.ge.s32.totalorder %s2772_s16, 1  ;;  %p3299_p1 = scmp.eq.s32.totalorder %s2890_s19, 0 }
  0x13   : > { %p363_p2 = scmp.lt.s32.totalorder %s2772_s16, 3  ;;  %s2775_s21 = smov [#allocation8]  }
  0x14   : > { %s404_s22 = sshll.u32 %s2775_s21, 4  ;;  %s2776_s24 = smov [#allocation7]   ;;  %s2908_s22 = int_to_ptr.vmem [resolvable:$true] %s404_s22 }
  0x15   : > { %p2895_p3 = pnand %p2033_p0, %p363_p2  ;;  %s2910_s25 = sshll.u32 %s2776_s24, 4  ;;  %s389_s25 = int_to_ptr.vmem [resolvable:$true] %s2910_s25 }
  0x16   : > { %s2549_s27 = scalar_lea.vmem %s376_s18, 256  ;;  %p2557_p11 = scmp.lt.s32.totalorder %s376_s18, %s376_s18 }
  0x17   : > { %s3314_s20 = scalar_select %p2895_p3, 1, 0 }
  0x18   : > { %p2317_p5 = pneg %p2895_p3  ;;  %p2550_p8 = scmp.ne.s32.totalorder %s376_s18, %s2549_s27 }
  0x19   : > { %p2558_p12 = scmp.lt.s32.totalorder %s2549_s27, %s2549_s27 }
  0x1a   : > { %p2904_p6 = pnand %p2317_p5, %p3299_p1 }
  0x1b   : > { %p2559_p13 = por %p2558_p12, %p2557_p11 }
  0x1c   : > { %p2914_p7 = pneg %p2904_p6 }
  0x1e   : > { %p2552_p9 = pnand %p2550_p8, %p2914_p7 }
  0x20   : > { %p2553_p10 = pneg %p2552_p9 }
  0x22   : > { %p2560_p0 = pnand %p2559_p13, %p2553_p10 }
  0x24   : > { %2563 = shalt.err (!%p2560_p0)
}
  0x25   : > { %s3293_s28 = smov 128   ;;  %s3294_s17 = smov 8  }
  0x26   : > { %s3317_s1 = sld [smem:[#allocation22_spill]]  ;;  %s2575_s14 = scalar_lea.vmem %s2908_s22, 1024 }
  0x27   : > { %p2576_p2 = scmp.ne.s32.totalorder %s2908_s22, %s2575_s14  ;;  %p2583_p9 = scmp.lt.s32.totalorder %s2908_s22, %s2908_s22 }
  0x28   : > { %p2584_p10 = scmp.lt.s32.totalorder %s2575_s14, %s2575_s14 }
  0x29   : > { %p2578_p5 = pnand %p2576_p2, %p2914_p7 }
  0x2a   : > { %p2585_p11 = por %p2584_p10, %p2583_p9 }
  0x2b   : > { %p2579_p8 = pneg %p2578_p5 }
  0x2c   : > { %2320 = dma.hbm_to_vmem [thread:$0]  (!%p2904_p6), %s3317_s1, 256, %s376_s18, [#allocation6], %s3293_s28, %s3293_s28, %s3294_s17  }
  0x2d   : > { %p2586_p12 = pnand %p2585_p11, %p2579_p8 }
  0x2f   : > { %2589 = shalt.err (!%p2586_p12)
}
  0x30   : > { %s3295_s27 = smov 64   ;;  %s3297_s13 = smov 4  }
  0x31   : > { %s3318_s4 = sld [smem:[#allocation24_spill]]  ;;  %s2601_s24 = scalar_lea.vmem %s389_s25, 3072 }
  0x32   : > { %p2602_p13 = scmp.ne.s32.totalorder %s389_s25, %s2601_s24  ;;  %p2609_p5 = scmp.lt.s32.totalorder %s389_s25, %s389_s25 }
  0x33   : > { %p2610_p8 = scmp.lt.s32.totalorder %s2601_s24, %s2601_s24 }
  0x34   : > { %p2604_p0 = pnand %p2602_p13, %p2914_p7 }
  0x35   : > { %p2611_p9 = por %p2610_p8, %p2609_p5 }
  0x36   : > { %p2605_p2 = pneg %p2604_p0 }
  0x37   : > { %2326 = dma.hbm_to_vmem [thread:$0]  (!%p2904_p6), %s3318_s4, 1024, %s2908_s22, [#allocation9], %s3295_s27, %s3295_s27, %s3297_s13  }
  0x38   : > { %p2612_p10 = pnand %p2611_p9, %p2605_p2 }
  0x3a   : > { %2615 = shalt.err (!%p2612_p10)
}
  0x3b   : > { %s2781_s14 = smov 192   ;;  %s2782_s28 = smov 12  }
  0x3c   : > { %s3319_s2 = sld [smem:[#allocation23_spill]]  ;;  %s2783_s22 = smov [#allocation10]  }
  0x3d   : > { %s426_s18 = sshll.u32 %s2783_s22, 4  ;;  %s2784_s21 = smov [#allocation11]   ;;  %s427_s18 = int_to_ptr.vmem [resolvable:$true] %s426_s18 }
  0x3e   : > { %s442_s27 = sshll.u32 %s2784_s21, 4  ;;  %s2627_s13 = scalar_lea.vmem %s427_s18, 2048  ;;  %s443_s27 = int_to_ptr.vmem [resolvable:$true] %s442_s27 }
  0x3f   : > { %p2628_p11 = scmp.ne.s32.totalorder %s427_s18, %s2627_s13  ;;  %p2635_p0 = scmp.lt.s32.totalorder %s427_s18, %s427_s18 }
  0x40   : > { %p2636_p2 = scmp.lt.s32.totalorder %s2627_s13, %s2627_s13 }
  0x41   : > { %p2630_p12 = pnand %p2628_p11, %p2914_p7 }
  0x42   : > { %2323 = dma.hbm_to_vmem [thread:$0]  (!%p2904_p6), %s3319_s2, 3072, %s389_s25, [#allocation6], %s2781_s14, %s2781_s14, %s2782_s28  }
  0x43   : > { %p2631_p13 = pneg %p2630_p12  ;;  %p2637_p5 = por %p2636_p2, %p2635_p0 }
  0x45   : > { %p2638_p8 = pnand %p2637_p5, %p2631_p13 }
  0x47   : > { %2641 = shalt.err (!%p2638_p8)
}
  0x48   : > { %s3320_s24 = smov 8   ;;  %s3321_s1 = smov 128  }
  0x49   : > { %s3322_s8 = sld [smem:[#allocation25_spill]]  ;;  %s2653_s17 = scalar_lea.vmem %s443_s27, 2048 }
  0x4a   : > { %p2654_p9 = scmp.ne.s32.totalorder %s443_s27, %s2653_s17  ;;  %p2661_p12 = scmp.lt.s32.totalorder %s443_s27, %s443_s27 }
  0x4b   : > { %p2662_p0 = scmp.lt.s32.totalorder %s2653_s17, %s2653_s17 }
  0x4c   : > { %p2656_p10 = pnand %p2654_p9, %p2914_p7 }
  0x4d   : > { %p2663_p13 = por %p2662_p0, %p2661_p12 }
  0x4e   : > { %p2657_p11 = pneg %p2656_p10 }
  0x4f   : > { %2329 = dma.hbm_to_vmem [thread:$0]  (!%p2904_p6), %s3322_s8, 2048, %s427_s18, [#allocation9], %s3321_s1, %s3321_s1, %s3320_s24  }
  0x50   : > { %p2664_p2 = pnand %p2663_p13, %p2657_p11 }
  0x52   : > { %2667 = shalt.err (!%p2664_p2)
}
  0x53   : > { %s3323_s13 = smov 4   ;;  %s3324_s14 = smov 64  }
  0x54   : > { %s3325_s10 = sld [smem:[#allocation26_spill]]  ;;  %s2032_s23 = sadd.s32 4294967294, %s2772_s16  }
  0x55   : > { %s2973_s26 = sadd.s32 1, %s2772_s16   ;;  %s40_s18 = sadd.s32 1, %s2768_s15 }
  0x56   : > { %3326 = sst [smem:[#allocation20_spill]] %s2973_s26  ;;  %s37_s24 = ssub.s32 %s2772_s16, %s2973_s26 }
  0x57   : > { %p47_p7 = scmp.ne.s32.totalorder %s2768_s15, %s2764_s30  ;;  %p38_p5 = scmp.eq.s32.totalorder %s37_s24, 0 }
  0x58   : > { %p48_p8 = scmp.eq.s32.totalorder %s2772_s16, 0  ;;  %p53_p9 = scmp.ne.s32.totalorder %s2764_s30, %s2760_s29 }
  0x59   : > { %p350_p10 = scmp.eq.s32.totalorder %s2890_s19, 1  ;;  %p356_p0 = scmp.eq.s32.totalorder %s2032_s23, 1 }
  0x5a   : > { %2332 = dma.hbm_to_vmem [thread:$0]  (!%p2904_p6), %s3325_s10, 2048, %s443_s27, [#allocation12], %s3324_s14, %s3324_s14, %s3323_s13  }
  0x5b   : > { %s2985_s1 = scalar_select %p38_p5, %s2768_s15, %s40_s18  }
  0x5c   : > { %p49_p11 = por %p48_p8, %p47_p7  ;;  %p2989_p12 = por %p3299_p1, %p53_p9 }
  0x5d   : > { %3327 = sst [smem:[#allocation21_spill]] %s2985_s1  ;;  %p2993_p6 = por %p350_p10, %p47_p7 }
  0x5e   : > { %s3328_s25 = scalar_select %p2989_p12, 1, 0 }
  0x5f   : > { %s3329_s27 = scalar_select %p2993_p6, 1, 0 }
  0x60   : > { %p2346_p13 = scmp.lt.s32.totalorder %s2772_s16, 2  ;;  %s465_s28 = sand.u32 1, %s2768_s15  }
  0x61   : > { %p2999_p2 = por %p356_p0, %p53_p9  ;;  %s2040_s22 = sshll.u32 %s465_s28, 3 }
  0x62   : > { %s2136_s21 = sshll.u32 %s2772_s16, 7  ;;  %s469_s4 = scalar_lea.vmem [#allocation2], %s2040_s22 }
  0x63   : > { %s3330_s17 = scalar_select %p2999_p2, 1, 0 }
  0x64   : > { %s3007_s2 = scalar_lea.hbm %s3277_s0, %s2136_s21  ;;  %s476_s8 = sshll.u32 %s469_s4, 4  ;;  %s3013_s8 = int_to_ptr.vmem [resolvable:$true] %s476_s8 }
  0x65   : > { %p3009_p7 = pnand %p2346_p13, %p49_p11  ;;  %s3015_s10 = scalar_lea.sflag [#allocation3], %s465_s28 }
  0x66   : > { %s2668_s1 = scalar_lea.hbm %s3007_s2, 128  ;;  %s2673_s22 = scalar_lea.hbm %s3277_s0, 256 }
  0x67   : > { %p2669_p5 = scmp.ne.s32.totalorder %s3007_s2, %s2668_s1  ;;  %p2670_p8 = pneg %p3009_p7 }
  0x68   : > { %p2674_p11 = scmp.lt.s32.totalorder %s3007_s2, %s3277_s0  ;;  %p2675_p0 = scmp.lt.s32.totalorder %s2673_s22, %s2668_s1 }
  0x69   : > { %p2671_p9 = pnand %p2670_p8, %p2669_p5 }
  0x6a   : > { %p2676_p13 = por %p2675_p0, %p2674_p11 }
  0x6b   : > { %p2672_p10 = pneg %p2671_p9 }
  0x6d   : > { %p2677_p4 = pnand %p2676_p13, %p2672_p10 }
  0x6f   : > { %2680 = shalt.err (!%p2677_p4)
}
  0x70   : > { %s2681_s28 = scalar_lea.vmem %s3013_s8, 128  ;;  %s2785_s15 = smov [#allocation2]  }
  0x71   : > { %p2682_p1 = scmp.ne.s32.totalorder %s3013_s8, %s2681_s28  ;;  %s2686_s26 = sshll.u32 %s2785_s15, 4  ;;  %s2687_s26 = int_to_ptr.vmem [resolvable:$false] %s2686_s26 }
  0x72   : > { %s2688_s21 = scalar_lea.vmem %s2687_s26, 256  ;;  %p2689_p9 = scmp.lt.s32.totalorder %s3013_s8, %s2687_s26 }
  0x73   : > { %p2684_p2 = pnand %p2682_p1, %p2670_p8  ;;  %p2690_p6 = scmp.lt.s32.totalorder %s2688_s21, %s2681_s28 }
  0x75   : > { %p2685_p5 = pneg %p2684_p2  ;;  %p2691_p12 = por %p2690_p6, %p2689_p9 }
  0x77   : > { %p2692_p3 = pnand %p2691_p12, %p2685_p5 }
  0x79   : > { %2695 = shalt.err (!%p2692_p3)
}
  0x7a   : > { %2336 = dma.hbm_to_vmem [thread:$0]  (!%p3009_p7), %s3007_s2, 128, %s3013_s8, %s3015_s10, %s3324_s14, %s3324_s14, %s3323_s13  }
  0x7b   : > { %p3332_p1 = scmp.ne.s32.totalorder %s3314_s20, 0 }
  0x7c   : > { %s3042_s15 = sand.u32 (!%p3332_p1), 1, %s2764_s30   ;;  %p3333_p3 = scmp.ne.s32.totalorder (!%p3332_p1), %s3328_s25, 0 }
  0x7d   : > { %488 = sbr.rel (%p3332_p1) target bundleno = 2730 (0xaaa), region = 76  ;;  %s2044_s26 = sshll.u32 (!%p3332_p1), %s3042_s15, 3 }
  0x7e   : > { %s491_s1 = scalar_lea.sflag (!%p3332_p1), [#allocation3], %s3042_s15  ;;  %s3048_s23 = scalar_lea.vmem (!%p3332_p1), [#allocation2], %s2044_s26 }
  0x82   : > { %2739 = dma.done.wait (%p3333_p3), %s491_s1, 128  }
  0x83   : > { %2741 = vsyncadd (%p3333_p3), %s491_s1, 4294967168  ;;  %p3334_p4 = scmp.eq.s32.totalorder %s2890_s19, 0 }
  0x85   : > { %2743 = dma.done.wait (%p3334_p4), [#allocation6], 3328   ;;  %p3335_p12 = pmov %p3334_p4 }
  0x86   : > { %p3336_p6 = pmov %p3334_p4 }
  0x87   : > { %2745 = vsyncadd (%p3335_p12), [#allocation6], 4294963968 }
  0x88   : > { %2747 = dma.done.wait (%p3336_p6), [#allocation9], 3072   ;;  %p3337_p2 = pmov %p3334_p4 }
  0x8a   : > { %2749 = vsyncadd (%p3337_p2), [#allocation9], 4294964224  ;;  %p3338_p7 = pmov %p3337_p2 }
  0x8b   : > { %p3339_p8 = pmov %p3337_p2 }
  0x8c   : > { %2751 = dma.done.wait (%p3338_p7), [#allocation12], 2048  }
  0x8d   : > { %2753 = vsyncadd (%p3339_p8), [#allocation12], 4294965248  ;;  %v2786_v0 = vmov 0   ;;  %v2787_v1 = vmov 0.0   ;;  %v2418_v2 = vld [vmem:[#allocation7 + $0xac] ss:$12 sps:$4 sm:$0xff]   ;;  %v603_v34 = vlaneseq }
  0x8e   : > { %778 = vmatprep.mubr.bf16.mxu0 %v2786_v0  ;;  %2205 = vmatprep.subr.bf16.mxu1 %v2787_v1  ;;  %v2420_v3 = vld [vmem:[#allocation7 + $0xa8] ss:$12 sps:$4 sm:$0xff]   ;;  %v2423_v5 = vld [vmem:[#allocation7 + $0x90] ss:$12 sps:$4 sm:$0xff]   ;;  %v2426_v7 = vld [vmem:[#allocation7 + $0x78] ss:$12 sps:$4 sm:$0xff]  }
  0x8f   : > { %746 = vmatprep.subr.bf16.mxu0 %v2418_v2  ;;  %v2421_v4 = vld [vmem:[#allocation7 + $0x94] ss:$12 sps:$4 sm:$0xff]   ;;  %v2424_v6 = vld [vmem:[#allocation7 + $0x7c] ss:$12 sps:$4 sm:$0xff]   ;;  %v2427_v8 = vld [vmem:[#allocation7 + $0x64] ss:$12 sps:$4 sm:$0xff]  }
  0x90   : > { %747 = vmatpush1.bf16.msra.mxu0 %v2420_v3  ;;  %v2429_v9 = vld [vmem:[#allocation7 + $0x60] ss:$12 sps:$4 sm:$0xff]   ;;  %v2442_v11 = vld [vmem:[#allocation7 + $0xb0] ss:$12 sps:$4 sm:$0xff]   ;;  %v2443_v12 = vld [vmem:[#allocation7 + $0x98] ss:$12 sps:$4 sm:$0xff]  }
  0x91   : > { %748 = vmatprep.subr.bf16.mxu0 %v2421_v4  ;;  %v2430_v10 = vld [vmem:[#allocation7 + $0x4c] ss:$12 sps:$4 sm:$0xff]   ;;  %2206 = vmatpush3.bf16.msra.mxu1 %v2442_v11  ;;  %v2432_v13 = vld [vmem:[#allocation7 + $0x48] ss:$12 sps:$4 sm:$0xff]   ;;  %v2435_v15 = vld [vmem:[#allocation7 + $0x30] ss:$12 sps:$4 sm:$0xff]  }
  0x92   : > { %2207 = vmatprep.subr.bf16.mxu1 %v2787_v1  ;;  %v2433_v14 = vld [vmem:[#allocation7 + $0x34] ss:$12 sps:$4 sm:$0xff]   ;;  %v2436_v16 = vld [vmem:[#allocation7 + $0x1c] ss:$12 sps:$4 sm:$0xff]   ;;  %v2438_v20 = vld [vmem:[#allocation7 + $0x18] ss:$12 sps:$4 sm:$0xff]  }
  0x93   : > { %v2141_v17 = vld [vmem:[%s3048_s23] sm:$0xff]   ;;  %v564_v21 = vld [vmem:[#allocation5] sm:$0xff]  ;;  %v565_v22 = vld [vmem:[#allocation5 + $0x8] sm:$0xff]  ;;  %vm2788_vm0 = vmmov 0   ;;  %v3090_v35 = vshrl.u32 %v603_v34, 7  ;;  %vm833_vm1 = vcmask 261120  }
  0x94   : > { %749 = vmatpush1.bf16.msra.mxu0 %v2423_v5  ;;  %v2444_v18 = vld [vmem:[#allocation7 + $0x80] ss:$12 sps:$4 sm:$0xff]   ;;  %v2445_v19 = vld [vmem:[#allocation7 + $0x68] ss:$12 sps:$4 sm:$0xff]   ;;  %v2439_v23 = vld [vmem:[#allocation7 + $0x4] ss:$12 sps:$4 sm:$0xff]   ;;  %v2142_v24 = vunpack.c.l.bf16 %v2141_v17  ;;  %v2143_v25 = vunpack.c.h.bf16 %v2141_v17  ;;  %2221 = vmatprep.mubr.msk.bf16.mxu1 %vm2788_vm0, %v2787_v1 }
  0x95   : > { %750 = vmatprep.subr.bf16.mxu0 %v2424_v6  ;;  %2208 = vmatpush3.bf16.msra.mxu1 %v2443_v12  ;;  %v2446_v26 = vld [vmem:[#allocation7 + $0x50] ss:$12 sps:$4 sm:$0xff]   ;;  %v2441_v27 = vld [vmem:[#allocation7] ss:$12 sps:$4 sm:$0xff]   ;;  %v2447_v30 = vld [vmem:[#allocation7 + $0x38] ss:$12 sps:$4 sm:$0xff]  }
  0x96   : > { %2209 = vmatprep.subr.bf16.mxu1 %v2787_v1  ;;  %v3072_v28 = vadd.f32 %v2142_v24, %v564_v21  ;;  %v3074_v29 = vadd.f32 %v2143_v25, %v565_v22  ;;  %v2448_v32 = vld [vmem:[#allocation7 + $0x20] ss:$12 sps:$4 sm:$0xff]   ;;  %v2449_v33 = vld [vmem:[#allocation7 + $0x8] ss:$12 sps:$4 sm:$0xff]   ;;  %v609_v36 = vsub.s32 1, %v3090_v35  ;;  %v605_v43 = vsub.s32 0, %v3090_v35 }
  0x97   : > { %v601_v38 = vld [vmem:[%s3280_s3] sm:$0x7]  ;;  %v613_v52 = vsub.s32 2, %v3090_v35  ;;  %vm881_vm2 = vcmask 130048   ;;  %s2789_s10 = smov 96   ;;  %s2790_s20 = smov 32  }
  0x98   : > { %751 = vmatpush1.bf16.msra.mxu0 %v2426_v7  ;;  %v568_v31 = vpack.c.bf16 %v3074_v29, %v3072_v28  ;;  %v610_v40 = vrot.slane %v601_v38, %v609_v36  ;;  %v606_v47 = vrot.slane %v601_v38, %v605_v43  ;;  %s2791_s13 = smov 64   ;;  %vm1341_vm3 = vcmask 523264   ;;  %v2110_v35 = vld [vmem:[%s3288_s11] ss:$0 sm:$0xff]  ;;  %s3340_s14 = sld [smem:[#allocation27_spill]] }
  0x99   : > { %752 = vmatprep.subr.bf16.mxu0 %v2427_v8  ;;  %2210 = vmatpush3.bf16.msra.mxu1 %v2444_v18  ;;  %v614_v53 = vrot.slane %v601_v38, %v613_v52  ;;  %vm1344_vm4 = vcmask 785408   ;;  %s2139_s25 = sshll.u32 %s2890_s19, 7  ;;  %s558_s18 = scalar_lea.vmem [#allocation13], %s2044_s26 }
  0x9a   : > { %2211 = vmatprep.subr.bf16.mxu1 %v2787_v1  ;;  %s1911_s22 = sshll.u32 %s558_s18, 4  ;;  %s3341_s28 = sld [smem:[#allocation28_spill]]  ;;  %s3232_s22 = int_to_ptr.vmem [resolvable:$true] %s1911_s22 }
  0x9b   : > { %s1898_s1 = scalar_lea.sflag [#allocation4], %s3042_s15  ;;  %s2696_s23 = scalar_lea.vmem %s3232_s22, 128 }
  0x9c   : > { %753 = vmatpush1.bf16.msra.mxu0 %v2429_v9  ;;  %p2697_p10 = scmp.ne.s32.totalorder %s3232_s22, %s2696_s23  ;;  %p3342_p11 = scmp.ne.s32.totalorder %s3329_s27, 0 }
  0x9d   : > { %754 = vmatprep.subr.bf16.mxu0 %v2430_v10  ;;  %2212 = vmatpush3.bf16.msra.mxu1 %v2445_v19  ;;  %s2792_s19 = smov [#allocation13]  }
  0x9e   : > { %2213 = vmatprep.subr.bf16.mxu1 %v2787_v1  ;;  %p2698_p0 = pnand %p2697_p10, %p3342_p11  ;;  %s2700_s26 = sshll.u32 %s2792_s19, 4  ;;  %s2701_s26 = int_to_ptr.vmem [resolvable:$false] %s2700_s26 }
  0x9f   : > { %s2702_s2 = scalar_lea.vmem %s2701_s26, 256  ;;  %p2703_p5 = scmp.lt.s32.totalorder %s3232_s22, %s2701_s26 }
  0xa0   : > { %755 = vmatpush1.bf16.msra.mxu0 %v2432_v13  ;;  %s3230_s21 = scalar_lea.hbm %s3341_s28, %s2139_s25  ;;  %p2699_p13 = pneg %p2698_p0 }
  0xa1   : > { %756 = vmatprep.subr.bf16.mxu0 %v2433_v14  ;;  %2214 = vmatpush3.bf16.msra.mxu1 %v2446_v26  ;;  %p2704_p9 = scmp.lt.s32.totalorder %s2702_s2, %s2696_s23 }
  0xa2   : > { %2215 = vmatprep.subr.bf16.mxu1 %v2787_v1 }
  0xa3   : > { %p2705_p1 = por %p2704_p9, %p2703_p5 }
  0xa4   : > { %757 = vmatpush1.bf16.msra.mxu0 %v2435_v15 }
  0xa5   : > { %758 = vmatprep.subr.bf16.mxu0 %v2436_v16  ;;  %2216 = vmatpush3.bf16.msra.mxu1 %v2447_v30  ;;  %p2706_p3 = pnand %p2705_p1, %p2699_p13 }
  0xa6   : > { %2217 = vmatprep.subr.bf16.mxu1 %v2787_v1 }
  0xa8   : > { %759 = vmatpush1.bf16.msra.mxu0 %v2438_v20 }
  0xa9   : > { %760 = vmatprep.subr.bf16.mxu0 %v2439_v23  ;;  %2218 = vmatpush3.bf16.msra.mxu1 %v2448_v32 }
  0xaa   : > { %2219 = vmatprep.subr.bf16.mxu1 %v2787_v1 }
  0xac   : > { %761 = vmatpush1.bf16.msra.mxu0 %v2441_v27 }
  0xad   : > { %2249 = vmatprep.subr.bf16.mxu0 %v2787_v1  ;;  %2220 = vmatpush3.bf16.msra.mxu1 %v2449_v33 }
  0xae   : > { %2225 = vmatprep.subr.bf16.mxu1 %v2787_v1 }
  0xaf   : > { %779 = vmatmul.mubr.bf16.vlgmr.msra.gmra.mxu0 %v568_v31 }
  0xb0   : > { %2251 = vmatprep.mubr.msk.bf16.mxu0 %vm2788_vm0, %v2787_v1  ;;  %2222 = vmatmul.mubr.bf16.vlgmr.msra.gmra.mxu1 %v568_v31 }
  0xb1   : > { %2227 = vmatprep.mubr.msk.bf16.mxu1 %vm2788_vm0, %v2787_v1 }
 0x16f   : > { %v780_v37 = vpop.f32.mrf.mxu0 }
 0x170   : > { %v781_v50 = vadd.f32 %v780_v37, %v606_v47  ;;  %v823_v54 = vpop.f32.mrf.mxu1 }
 0x171   : > { %v782_v39 = vpop.f32.mrf.mxu0  ;;  %v824_v56 = vadd.f32 %v823_v54, %v614_v53 }
 0x172   : > { %v783_v44 = vadd.f32 %v782_v39, %v610_v40  ;;  %v2223_v55 = vpop.f32.mrf.mxu1 }
 0x173   : > { %v784_v41 = vpop.f32.mrf.mxu0 }
 0x174   : > { %v785_v49 = vadd.f32 %v784_v41, %v606_v47  ;;  %v826_v57 = vpop.f32.mrf.mxu1 }
 0x175   : > { %v786_v42 = vpop.f32.mrf.mxu0  ;;  %v827_v58 = vadd.f32 %v826_v57, %v614_v53 }
 0x176   : > { %v787_v45 = vadd.f32 %v786_v42, %v610_v40  ;;  %v830_v51 = vpack.c.bf16 %v785_v49, %v781_v50  ;;  %v2224_v59 = vpop.f32.mrf.mxu1 }
 0x177   : > { %v3107_v60 = vpack.c.bf16 %v827_v58, %v824_v56 }
 0x178   : > { %v831_v46 = vpack.c.bf16 %v787_v45, %v783_v44 }
 0x17a   : > { %v838_v48 = vsel %vm833_vm1, %v831_v46, 0 }
 0x17b   : > { %2226 = vmatpush3.bf16.xpose.msra.mxu1 %v838_v48 }
 0x17c   : > { %2231 = vmatprep.subr.bf16.mxu1 %v2787_v1 }
 0x182   : > { %2228 = vmatmul.mubr.msk.bf16.vlgmr.msra.gmra.mxu1 %vm833_vm1, %v830_v51 }
 0x183   : > { %2233 = vmatprep.mubr.msk.bf16.mxu1 %vm2788_vm0, %v2787_v1  ;;  %2232 = vmatpush3.bf16.msra.mxu1 %v3107_v60 }
 0x184   : > { %2237 = vmatprep.subr.bf16.mxu1 %v2787_v1 }
 0x242   : > { %v874_v61 = vpop.f32.mrf.mxu1 }
 0x243   : > { %v882_v62 = vsel %vm881_vm2, %v874_v61, -inf }
 0x244   : > { %883 = vmax.xlane.f32.xlu0 %v882_v62  ;;  %v2229_v63 = vpop.f32.mrf.mxu1 }
 0x246   : > { %v877_v2 = vpop.f32.mrf.mxu1 }
 0x247   : > { %v885_v3 = vsel %vm881_vm2, %v877_v2, -inf }
 0x248   : > { %886 = vmax.xlane.f32.xlu0 %v885_v3  ;;  %v2230_v4 = vpop.f32.mrf.mxu1 }
 0x25e   : > { %953 = vrot.lane.b32.xlu0 %v831_v46, %s2789_s10 }
 0x262   : > { %1196 = vrot.lane.b32.xlu0 %v831_v46, %s2790_s20 }
 0x2cd   : > { %v884_v5 = vpop.xlane.xlu0 %883 }
 0x2ce   : > { %v888_v6 = vsub.f32 %v874_v61, %v884_v5 }
 0x2d0   : > { %v890_v7 = vmul.f32 1.442695, %v888_v6 }
 0x2d1   : > { %v887_v8 = vpop.xlane.xlu0 %886 }
 0x2d2   : > { %2498 = vpow2.f32 %v890_v7  ;;  %v889_v9 = vsub.f32 %v877_v2, %v887_v8 }
 0x2d4   : > { %v892_v10 = vmul.f32 1.442695, %v889_v9 }
 0x2d5   : > { %v954_v18 = vpop.permute.xlu0 %953 }
 0x2d6   : > { %2500 = vpow2.f32 %v892_v10  ;;  %v959_v31 = vsel %vm833_vm1, %v954_v18, 0 }
 0x2d9   : > { %v1197_v23 = vpop.permute.xlu0 %1196 }
 0x2da   : > { %v1202_v27 = vsel %vm833_vm1, %v1197_v23, 0 }
 0x2df   : > { %v2499_v11 = vpop.eup %2498 }
 0x2e0   : > { %v894_v12 = vsel %vm881_vm2, %v2499_v11, 0.0 }
 0x2e1   : > { %895 = vadd.xlane.f32.xlu1 %v894_v12 }
 0x2e3   : > { %v2501_v13 = vpop.eup %2500 }
 0x2e4   : > { %v897_v14 = vsel %vm881_vm2, %v2501_v13, 0.0 }
 0x2e5   : > { %898 = vadd.xlane.f32.xlu1 %v897_v14 }
 0x2f6   : > { %950 = vrot.lane.b32.xlu1 %v830_v51, %s2789_s10 }
 0x2fa   : > { %1075 = vrot.lane.b32.xlu1 %v831_v46, %s2791_s13 }
 0x2fe   : > { %1073 = vrot.lane.b32.xlu1 %v830_v51, %s2791_s13 }
 0x302   : > { %1194 = vrot.lane.b32.xlu1 %v830_v51, %s2790_s20 }
 0x36a   : > { %v896_v15 = vpop.xlane.xlu1 %895 }
 0x36b   : > { %2502 = vrcp.f32 %v896_v15 }
 0x36e   : > { %v899_v16 = vpop.xlane.xlu1 %898 }
 0x36f   : > { %2504 = vrcp.f32 %v899_v16 }
 0x372   : > { %v951_v17 = vpop.permute.xlu1 %950 }
 0x376   : > { %v1076_v19 = vpop.permute.xlu1 %1075 }
 0x377   : > { %v1081_v20 = vsel %vm833_vm1, %v1076_v19, 0 }
 0x378   : > { %2250 = vmatpush3.bf16.xpose.msra.mxu0 %v1081_v20  ;;  %v2503_v21 = vpop.eup %2502 }
 0x379   : > { %2261 = vmatprep.subr.bf16.mxu0 %v2787_v1  ;;  %v902_v24 = vmul.f32 %v2503_v21, %v2499_v11 }
 0x37a   : > { %v1074_v26 = vpop.permute.xlu1 %1073 }
 0x37c   : > { %v2505_v22 = vpop.eup %2504 }
 0x37d   : > { %v903_v25 = vmul.f32 %v2505_v22, %v2501_v13 }
 0x37e   : > { %v1195_v32 = vpop.permute.xlu1 %1194 }
 0x37f   : > { %2252 = vmatmul.mubr.msk.bf16.vlgmr.msra.gmra.mxu0 %vm833_vm1, %v1074_v26  ;;  %v904_v30 = vpack.c.bf16 %v903_v25, %v902_v24 }
 0x380   : > { %2262 = vmatpush3.bf16.xpose.msra.mxu0 %v1202_v27  ;;  %2263 = vmatprep.mubr.msk.bf16.mxu0 %vm2788_vm0, %v2787_v1 }
 0x381   : > { %2234 = vmatmul.mubr.msk.bf16.vlgmr.msra.gmra.mxu1 %vm881_vm2, %v904_v30  ;;  %2273 = vmatprep.subr.bf16.mxu0 %v2787_v1 }
 0x382   : > { %2238 = vmatpush3.bf16.xpose.msra.mxu1 %v959_v31  ;;  %2239 = vmatprep.mubr.msk.bf16.mxu1 %vm2788_vm0, %v2787_v1 }
 0x383   : > { %2243 = vmatprep.subr.bf16.mxu1 %v2787_v1 }
 0x387   : > { %2264 = vmatmul.mubr.msk.bf16.vlgmr.msra.gmra.mxu0 %vm833_vm1, %v1195_v32 }
 0x388   : > { %2289 = vmatprep.mubr.msk.bf16.mxu0 %vm2788_vm0, %v2787_v1 }
 0x389   : > { %2240 = vmatmul.mubr.msk.bf16.vlgmr.msra.gmra.mxu1 %vm833_vm1, %v951_v17 }
 0x38a   : > { %2245 = vmatprep.mubr.msk.bf16.mxu1 %vm2788_vm0, %v2787_v1 }
 0x43f   : > { %v1117_v33 = vpop.f32.mrf.mxu0 }
 0x440   : > { %v1124_v52 = vsel %vm881_vm2, %v1117_v33, -inf }
 0x441   : > { %v3139_v34 = vpop.f32.mrf.mxu1  ;;  %v2253_v37 = vpop.f32.mrf.mxu0 }
 0x443   : > { %v2235_v38 = vpop.f32.mrf.mxu1  ;;  %v1120_v39 = vpop.f32.mrf.mxu0 }
 0x444   : > { %v1127_v55 = vsel %vm881_vm2, %v1120_v39, -inf }
 0x445   : > { %v3141_v40 = vpop.f32.mrf.mxu1  ;;  %v2254_v41 = vpop.f32.mrf.mxu0 }
 0x447   : > { %v2236_v42 = vpop.f32.mrf.mxu1  ;;  %v1238_v44 = vpop.f32.mrf.mxu0 }
 0x448   : > { %v1245_v57 = vsel %vm881_vm2, %v1238_v44, -inf }
 0x449   : > { %v995_v45 = vpop.f32.mrf.mxu1  ;;  %v2265_v46 = vpop.f32.mrf.mxu0 }
 0x44a   : > { %v1002_v47 = vsel %vm881_vm2, %v995_v45, -inf }
 0x44b   : > { %v1241_v48 = vpop.f32.mrf.mxu0  ;;  %1003 = vmax.xlane.f32.xlu0 %v1002_v47  ;;  %v2241_v49 = vpop.f32.mrf.mxu1 }
 0x44c   : > { %v1248_v56 = vsel %vm881_vm2, %v1241_v48, -inf }
 0x44d   : > { %v998_v50 = vpop.f32.mrf.mxu1  ;;  %v2266_v51 = vpop.f32.mrf.mxu0 }
 0x44e   : > { %v1005_v53 = vsel %vm881_vm2, %v998_v50, -inf }
 0x44f   : > { %1125 = vmax.xlane.f32.xlu0 %v1124_v52  ;;  %1006 = vmax.xlane.f32.xlu1 %v1005_v53  ;;  %v2242_v54 = vpop.f32.mrf.mxu1 }
 0x453   : > { %1128 = vmax.xlane.f32.xlu0 %v1127_v55  ;;  %1249 = vmax.xlane.f32.xlu1 %v1248_v56 }
 0x457   : > { %1246 = vmax.xlane.f32.xlu0 %v1245_v57  ;;  %v2450_v57 = vld [vmem:[#allocation8 + $0x38] sm:$0xff]  }
 0x458   : > { %2274 = vmatpush3.bf16.msra.mxu0 %v2450_v57  ;;  %v2473_v57 = vld [vmem:[#allocation10 + $0x20] ss:$8 sps:$4 sm:$0xff]  }
 0x459   : > { %2275 = vmatprep.subr.bf16.mxu0 %v2787_v1 }
 0x4d4   : > { %v1004_v58 = vpop.xlane.xlu0 %1003 }
 0x4d5   : > { %v1008_v6 = vsub.f32 %v995_v45, %v1004_v58  ;;  %v2451_v58 = vld [vmem:[#allocation8 + $0x30] sm:$0xff]  }
 0x4d6   : > { %2276 = vmatpush3.bf16.msra.mxu0 %v2451_v58  ;;  %v2478_v58 = vld [vmem:[#allocation10 + $0x14] ss:$8 sps:$4 sm:$0xff]  }
 0x4d7   : > { %v1010_v12 = vmul.f32 1.442695, %v1008_v6  ;;  %2277 = vmatprep.subr.bf16.mxu0 %v2787_v1 }
 0x4d8   : > { %v1126_v59 = vpop.xlane.xlu0 %1125  ;;  %v1007_v61 = vpop.xlane.xlu1 %1006 }
 0x4d9   : > { %v1130_v62 = vsub.f32 %v1117_v33, %v1126_v59  ;;  %v1009_v7 = vsub.f32 %v998_v50, %v1007_v61  ;;  %v2452_v59 = vld [vmem:[#allocation8 + $0x28] sm:$0xff]   ;;  %v2453_v61 = vld [vmem:[#allocation8 + $0x20] sm:$0xff]  }
 0x4da   : > { %2278 = vmatpush3.bf16.msra.mxu0 %v2452_v59  ;;  %v2476_v59 = vld [vmem:[#allocation10 + $0x10] ss:$8 sps:$4 sm:$0xff]  }
 0x4db   : > { %v1132_v63 = vmul.f32 1.442695, %v1130_v62  ;;  %v1012_v13 = vmul.f32 1.442695, %v1009_v7  ;;  %2279 = vmatprep.subr.bf16.mxu0 %v2787_v1  ;;  %v2454_v62 = vld [vmem:[#allocation8 + $0x18] sm:$0xff]  }
 0x4dc   : > { %v1129_v2 = vpop.xlane.xlu0 %1128  ;;  %v1250_v3 = vpop.xlane.xlu1 %1249 }
 0x4dd   : > { %2506 = vpow2.f32 %v1132_v63  ;;  %v1131_v4 = vsub.f32 %v1120_v39, %v1129_v2  ;;  %v1252_v5 = vsub.f32 %v1241_v48, %v1250_v3  ;;  %v2455_v2 = vld [vmem:[#allocation8 + $0x10] sm:$0xff]  }
 0x4de   : > { %2280 = vmatpush3.bf16.msra.mxu0 %v2453_v61  ;;  %v2481_v61 = vld [vmem:[#allocation10 + $0x4] ss:$8 sps:$4 sm:$0xff]  }
 0x4df   : > { %v1134_v8 = vmul.f32 1.442695, %v1131_v4  ;;  %v1255_v9 = vmul.f32 1.442695, %v1252_v5  ;;  %2281 = vmatprep.subr.bf16.mxu0 %v2787_v1  ;;  %v2456_v5 = vld [vmem:[#allocation8 + $0x8] sm:$0xff]  }
 0x4e0   : > { %v1247_v10 = vpop.xlane.xlu0 %1246 }
 0x4e1   : > { %2508 = vpow2.f32 %v1134_v8  ;;  %v1251_v11 = vsub.f32 %v1238_v44, %v1247_v10 }
 0x4e2   : > { %2510 = vpow2.f32 %v1255_v9  ;;  %2282 = vmatpush3.bf16.msra.mxu0 %v2454_v62  ;;  %v2457_v9 = vld [vmem:[#allocation8] sm:$0xff]  }
 0x4e3   : > { %v1253_v14 = vmul.f32 1.442695, %v1251_v11  ;;  %2283 = vmatprep.subr.bf16.mxu0 %v2787_v1  ;;  %v2479_v62 = vld [vmem:[#allocation10] ss:$8 sps:$4 sm:$0xff]  }
 0x4e5   : > { %2512 = vpow2.f32 %v1253_v14 }
 0x4e6   : > { %2514 = vpow2.f32 %v1010_v12  ;;  %2284 = vmatpush3.bf16.msra.mxu0 %v2455_v2  ;;  %v2484_v2 = vld [vmem:[#allocation11 + $0x70] sm:$0xff]  }
 0x4e7   : > { %2516 = vpow2.f32 %v1012_v13  ;;  %2285 = vmatprep.subr.bf16.mxu0 %v2787_v1 }
 0x4ea   : > { %v2507_v15 = vpop.eup %2506  ;;  %2286 = vmatpush3.bf16.msra.mxu0 %v2456_v5  ;;  %v2487_v5 = vld [vmem:[#allocation11 + $0x28] sm:$0xff]  }
 0x4eb   : > { %v1136_v16 = vsel %vm881_vm2, %v2507_v15, 0.0  ;;  %2287 = vmatprep.subr.bf16.mxu0 %v2787_v1 }
 0x4ec   : > { %1137 = vadd.xlane.f32.xlu0 %v1136_v16 }
 0x4ee   : > { %v2509_v17 = vpop.eup %2508  ;;  %2288 = vmatpush3.bf16.msra.mxu0 %v2457_v9  ;;  %v2491_v9 = vld [vmem:[#allocation11 + $0x18] sm:$0xff]  }
 0x4ef   : > { %v1139_v18 = vsel %vm881_vm2, %v2509_v17, 0.0  ;;  %v2511_v19 = vpop.eup %2510 }
 0x4f0   : > { %1140 = vadd.xlane.f32.xlu1 %v1139_v18  ;;  %v1260_v23 = vsel %vm881_vm2, %v2511_v19, 0.0 }
 0x4f2   : > { %v2513_v20 = vpop.eup %2512 }
 0x4f3   : > { %v2515_v21 = vpop.eup %2514  ;;  %v1257_v22 = vsel %vm881_vm2, %v2513_v20, 0.0 }
 0x4f4   : > { %v2517_v24 = vpop.eup %2516  ;;  %1258 = vadd.xlane.f32.xlu0 %v1257_v22  ;;  %1261 = vadd.xlane.f32.xlu1 %v1260_v23  ;;  %v1014_v25 = vsel %vm881_vm2, %v2515_v21, 0.0 }
 0x4f5   : > { %v1017_v26 = vsel %vm881_vm2, %v2517_v24, 0.0 }
 0x4f8   : > { %1015 = vadd.xlane.f32.xlu0 %v1014_v25  ;;  %1018 = vadd.xlane.f32.xlu1 %v1017_v26 }
 0x509   : > { %1147 = vrot.lane.b32.xlu1 %v3107_v60, %s2791_s13 }
 0x50d   : > { %1268 = vrot.lane.b32.xlu1 %v3107_v60, %s2790_s20 }
 0x50e   : > { %1026 = vrot.lane.b32.xlu0 %v3107_v60, %s2789_s10 }
 0x575   : > { %v1138_v27 = vpop.xlane.xlu0 %1137 }
 0x579   : > { %v1141_v30 = vpop.xlane.xlu1 %1140 }
 0x57d   : > { %v1259_v31 = vpop.xlane.xlu0 %1258  ;;  %v1262_v32 = vpop.xlane.xlu1 %1261 }
 0x581   : > { %v1016_v33 = vpop.xlane.xlu0 %1015  ;;  %v1019_v37 = vpop.xlane.xlu1 %1018 }
 0x582   : > { %2518 = vrcp.f32 %v1016_v33 }
 0x583   : > { %2520 = vrcp.f32 %v1019_v37 }
 0x584   : > { %2522 = vrcp.f32 %v1141_v30 }
 0x585   : > { %v1027_v38 = vpop.permute.xlu0 %1026  ;;  %2524 = vrcp.f32 %v1138_v27  ;;  %v1148_v46 = vpop.permute.xlu1 %1147 }
 0x586   : > { %2244 = vmatpush3.bf16.msra.mxu1 %v1027_v38  ;;  %2526 = vrcp.f32 %v1259_v31  ;;  %v2083_v38 = vld [vmem:[%s3282_s5] ss:$0 sm:$0xff] }
 0x587   : > { %2255 = vmatprep.subr.bf16.mxu1 %v2787_v1  ;;  %2528 = vrcp.f32 %v1262_v32 }
 0x589   : > { %v1269_v53 = vpop.permute.xlu1 %1268 }
 0x58f   : > { %v2519_v39 = vpop.eup %2518 }
 0x590   : > { %v2521_v41 = vpop.eup %2520  ;;  %v1022_v42 = vmul.f32 %v2519_v39, %v2515_v21 }
 0x591   : > { %v1023_v60 = vmul.f32 %v2521_v41, %v2517_v24  ;;  %v2523_v45 = vpop.eup %2522 }
 0x592   : > { %v2525_v47 = vpop.eup %2524  ;;  %v1145_v48 = vmul.f32 %v2523_v45, %v2509_v17 }
 0x593   : > { %v1024_v44 = vpack.c.bf16 %v1023_v60, %v1022_v42  ;;  %v1144_v49 = vmul.f32 %v2525_v47, %v2507_v15  ;;  %v2527_v50 = vpop.eup %2526 }
 0x594   : > { %v2529_v52 = vpop.eup %2528  ;;  %v1265_v54 = vmul.f32 %v2527_v50, %v2513_v20  ;;  %v2461_v50 = vld [vmem:[#allocation10 + $0x60] ss:$8 sps:$4 sm:$0xff]  }
 0x595   : > { %2246 = vmatmul.mubr.msk.bf16.vlgmr.msra.gmra.mxu1 %vm881_vm2, %v1024_v44  ;;  %v1146_v51 = vpack.c.bf16 %v1145_v48, %v1144_v49  ;;  %v1266_v55 = vmul.f32 %v2529_v52, %v2511_v19  ;;  %v2458_v48 = vld [vmem:[#allocation10 + $0x70] ss:$8 sps:$4 sm:$0xff]   ;;  %v2463_v49 = vld [vmem:[#allocation10 + $0x64] ss:$8 sps:$4 sm:$0xff]   ;;  %v2467_v52 = vld [vmem:[#allocation10 + $0x40] ss:$8 sps:$4 sm:$0xff]  }
 0x596   : > { %2256 = vmatpush3.bf16.msra.mxu1 %v1148_v46  ;;  %2257 = vmatprep.mubr.msk.bf16.mxu1 %vm2788_vm0, %v2787_v1 }
 0x597   : > { %2267 = vmatprep.subr.bf16.mxu1 %v2787_v1  ;;  %v1267_v56 = vpack.c.bf16 %v1266_v55, %v1265_v54  ;;  %v2472_v54 = vld [vmem:[#allocation10 + $0x34] ss:$8 sps:$4 sm:$0xff]   ;;  %v2470_v55 = vld [vmem:[#allocation10 + $0x30] ss:$8 sps:$4 sm:$0xff]  }
 0x59d   : > { %2258 = vmatmul.mubr.msk.bf16.vlgmr.msra.gmra.mxu1 %vm881_vm2, %v1146_v51  ;;  %v2464_v51 = vld [vmem:[#allocation10 + $0x50] ss:$8 sps:$4 sm:$0xff]  }
 0x59e   : > { %2268 = vmatpush3.bf16.msra.mxu1 %v1269_v53  ;;  %2269 = vmatprep.mubr.msk.bf16.mxu1 %vm2788_vm0, %v2787_v1  ;;  %v2469_v53 = vld [vmem:[#allocation10 + $0x44] ss:$8 sps:$4 sm:$0xff]  }
 0x5a5   : > { %2270 = vmatmul.mubr.msk.bf16.vlgmr.msra.gmra.mxu1 %vm881_vm2, %v1267_v56  ;;  %v2475_v56 = vld [vmem:[#allocation10 + $0x24] ss:$8 sps:$4 sm:$0xff]  }
 0x5a6   : > { %1648 = vmatprep.mubr.bf16.mxu1 %v2786_v0 }
 0x655   : > { %v1066_v63 = vpop.f32.mrf.mxu1 }
 0x657   : > { %v2247_v0 = vpop.f32.mrf.mxu1 }
 0x658   : > { %v2483_v0 = vld [vmem:[#allocation11 + $0x38] sm:$0xff]  }
 0x659   : > { %v1069_v3 = vpop.f32.mrf.mxu1 }
 0x65a   : > { %v2403_v4 = vpack.i.bf16 %v1069_v3, %v1066_v63  ;;  %v2482_v63 = vld [vmem:[#allocation11 + $0x78] sm:$0xff]   ;;  %v2485_v3 = vld [vmem:[#allocation11 + $0x30] sm:$0xff]  }
 0x65b   : > { %v2248_v6 = vpop.f32.mrf.mxu1  ;;  %2183 = vmatprep.subr.bf16.mxu0 %v2482_v63 }
 0x65c   : > { %2404 = vrot.lane.b32.xlu1 %v2403_v4, %s2790_s20  ;;  %v2486_v4 = vld [vmem:[#allocation11 + $0x68] sm:$0xff]   ;;  %v2488_v6 = vld [vmem:[#allocation11 + $0x60] sm:$0xff]  }
 0x65d   : > { %v1187_v7 = vpop.f32.mrf.mxu1 }
 0x65f   : > { %v2259_v8 = vpop.f32.mrf.mxu1 }
 0x660   : > { %v2490_v8 = vld [vmem:[#allocation11 + $0x58] sm:$0xff]  }
 0x661   : > { %v1190_v10 = vpop.f32.mrf.mxu1 }
 0x662   : > { %v2408_v11 = vpack.i.bf16 %v1190_v10, %v1187_v7  ;;  %v2489_v7 = vld [vmem:[#allocation11 + $0x20] sm:$0xff]  }
 0x663   : > { %v2260_v12 = vpop.f32.mrf.mxu1 }
 0x664   : > { %2409 = vrot.lane.b32.xlu0 %v2408_v11, %s2791_s13 }
 0x665   : > { %v1308_v13 = vpop.f32.mrf.mxu1 }
 0x667   : > { %v2271_v14 = vpop.f32.mrf.mxu1 }
 0x669   : > { %v1311_v15 = vpop.f32.mrf.mxu1 }
 0x66a   : > { %v2413_v16 = vpack.i.bf16 %v1311_v15, %v1308_v13 }
 0x66b   : > { %v2272_v17 = vpop.f32.mrf.mxu1 }
 0x66c   : > { %2414 = vrot.lane.b32.xlu1 %v2413_v16, %s2789_s10 }
 0x6ce   : > { %v2405_v18 = vpop.permute.xlu1 %2404 }
 0x6cf   : > { %v2407_v20 = vunpack.i.h.bf16 %v2405_v18  ;;  %v2406_v21 = vunpack.i.l.bf16 %v2405_v18 }
 0x6d1   : > { %v1340_v24 = vsel %vm833_vm1, %v3141_v40, %v2407_v20  ;;  %v1339_v25 = vsel %vm833_vm1, %v3139_v34, %v2406_v21 }
 0x6d6   : > { %v2410_v19 = vpop.permute.xlu0 %2409 }
 0x6d7   : > { %v2412_v22 = vunpack.i.h.bf16 %v2410_v19  ;;  %v2411_v1 = vunpack.i.l.bf16 %v2410_v19 }
 0x6d9   : > { %v1343_v30 = vsel %vm1341_vm3, %v1340_v24, %v2412_v22  ;;  %v1342_v31 = vsel %vm1341_vm3, %v1339_v25, %v2411_v1 }
 0x6de   : > { %v2415_v23 = vpop.permute.xlu1 %2414 }
 0x6df   : > { %v2417_v26 = vunpack.i.h.bf16 %v2415_v23  ;;  %v2416_v27 = vunpack.i.l.bf16 %v2415_v23 }
 0x6e1   : > { %v1346_v32 = vsel %vm1344_vm4, %v1343_v30, %v2417_v26  ;;  %v1345_v33 = vsel %vm1344_vm4, %v1342_v31, %v2416_v27  ;;  %v2092_v26 = vld [vmem:[%s3283_s6] ss:$0 sm:$0xff] }
 0x6e2   : > { %v1347_v37 = vpack.c.bf16 %v1346_v32, %v1345_v33  ;;  %v2093_v33 = vld [vmem:[%s3284_s7] ss:$0 sm:$0xff] }
 0x6e4   : > { %2290 = vmatmul.mubr.bf16.vlgmr.msra.gmra.mxu0 %v1347_v37 }
 0x6e5   : > { %2184 = vmatpush3.bf16.msra.mxu0 %v2483_v0 }
 0x6e6   : > { %2185 = vmatprep.subr.bf16.mxu0 %v2484_v2 }
 0x6e9   : > { %2186 = vmatpush3.bf16.msra.mxu0 %v2485_v3 }
 0x6ea   : > { %2187 = vmatprep.subr.bf16.mxu0 %v2486_v4 }
 0x6ed   : > { %2188 = vmatpush3.bf16.msra.mxu0 %v2487_v5 }
 0x6ee   : > { %2189 = vmatprep.subr.bf16.mxu0 %v2488_v6 }
 0x6f1   : > { %2190 = vmatpush3.bf16.msra.mxu0 %v2489_v7 }
 0x6f2   : > { %2191 = vmatprep.subr.bf16.mxu0 %v2490_v8 }
 0x6f5   : > { %2192 = vmatpush3.bf16.msra.mxu0 %v2491_v9 }
 0x7a4   : > { %v1453_v39 = vpop.f32.mrf.mxu0 }
 0x7a5   : > { %v1454_v41 = vadd.f32 %v2083_v38, %v1453_v39 }
 0x7a6   : > { %v2291_v42 = vpop.f32.mrf.mxu0 }
 0x7a7   : > { %v3189_v40 = vadd.f32 %v1454_v41, %v3072_v28  ;;  %v2460_v28 = vld [vmem:[#allocation10 + $0x74] ss:$8 sps:$4 sm:$0xff]  }
 0x7a8   : > { %v1456_v60 = vpop.f32.mrf.mxu0  ;;  %1616 = vmatprep.subr.bf16.mxu1 %v2460_v28  ;;  %v2492_v42 = vld [vmem:[#allocation11 + $0x50] sm:$0xff]  }
 0x7a9   : > { %v1457_v34 = vadd.f32 %v2083_v38, %v1456_v60  ;;  %1464 = vadd.xlane.f32.xlu0 %v3189_v40  ;;  %v1471_v46 = vmul.f32 %v3189_v40, %v3189_v40  ;;  %1617 = vmatpush1.bf16.msra.mxu1 %v2458_v48  ;;  %v2494_v60 = vld [vmem:[#allocation11 + $0x48] sm:$0xff]  }
 0x7aa   : > { %v2292_v44 = vpop.f32.mrf.mxu0  ;;  %1618 = vmatprep.subr.bf16.mxu1 %v2463_v49  ;;  %2193 = vmatprep.subr.bf16.mxu0 %v2492_v42 }
 0x7ab   : > { %v3193_v45 = vadd.f32 %v1457_v34, %v3074_v29  ;;  %v2466_v29 = vld [vmem:[#allocation10 + $0x54] ss:$8 sps:$4 sm:$0xff]   ;;  %v2495_v34 = vld [vmem:[#allocation11 + $0x8] sm:$0xff]   ;;  %v2496_v44 = vld [vmem:[#allocation11 + $0x40] sm:$0xff]  }
 0x7ad   : > { %1473 = vadd.xlane.f32.xlu0 %v1471_v46  ;;  %1466 = vadd.xlane.f32.xlu1 %v3193_v45  ;;  %v1472_v47 = vmul.f32 %v3193_v45, %v3193_v45  ;;  %v1524_v46 = vld [vmem:[%s3286_s9] sm:$0x3] }
 0x7ae   : > { %1619 = vmatpush1.bf16.msra.mxu1 %v2461_v50  ;;  %v1533_v28 = vrot.slane %v1524_v46, %v609_v36  ;;  %v1529_v48 = vrot.slane %v1524_v46, %v605_v43 }
 0x7af   : > { %1620 = vmatprep.subr.bf16.mxu1 %v2466_v29 }
 0x7b1   : > { %1475 = vadd.xlane.f32.xlu0 %v1472_v47 }
 0x7b2   : > { %1621 = vmatpush1.bf16.msra.mxu1 %v2464_v51 }
 0x7b3   : > { %1622 = vmatprep.subr.bf16.mxu1 %v2469_v53 }
 0x7b6   : > { %1623 = vmatpush1.bf16.msra.mxu1 %v2467_v52 }
 0x7b7   : > { %1624 = vmatprep.subr.bf16.mxu1 %v2472_v54 }
 0x7ba   : > { %1625 = vmatpush1.bf16.msra.mxu1 %v2470_v55 }
 0x7bb   : > { %1626 = vmatprep.subr.bf16.mxu1 %v2475_v56 }
 0x7be   : > { %1627 = vmatpush1.bf16.msra.mxu1 %v2473_v57 }
 0x7bf   : > { %1628 = vmatprep.subr.bf16.mxu1 %v2478_v58 }
 0x7c2   : > { %1629 = vmatpush1.bf16.msra.mxu1 %v2476_v59 }
 0x7c3   : > { %1630 = vmatprep.subr.bf16.mxu1 %v2481_v61 }
 0x7c6   : > { %1631 = vmatpush1.bf16.msra.mxu1 %v2479_v62 }
 0x832   : > { %v1465_v10 = vpop.xlane.xlu0 %1464 }
 0x833   : > { %v1469_v11 = vmul.f32 0.0078125, %v1465_v10 }
 0x835   : > { %v1479_v14 = vmul.f32 %v1469_v11, %v1469_v11  ;;  %v1483_v23 = vsub.f32 %v3189_v40, %v1469_v11  ;;  %v2493_v40 = vld [vmem:[#allocation11 + $0x10] sm:$0xff]  }
 0x836   : > { %v1474_v12 = vpop.xlane.xlu0 %1473  ;;  %v1467_v13 = vpop.xlane.xlu1 %1466  ;;  %2194 = vmatpush3.bf16.msra.mxu0 %v2493_v40 }
 0x837   : > { %v1477_v15 = vmul.f32 0.0078125, %v1474_v12  ;;  %v1470_v16 = vmul.f32 0.0078125, %v1467_v13  ;;  %2195 = vmatprep.subr.bf16.mxu0 %v2494_v60 }
 0x839   : > { %v1481_v17 = vsub.f32 %v1477_v15, %v1479_v14  ;;  %v1480_v20 = vmul.f32 %v1470_v16, %v1470_v16  ;;  %v1484_v27 = vsub.f32 %v3193_v45, %v1470_v16  ;;  %v2497_v45 = vld [vmem:[#allocation11] sm:$0xff]  }
 0x83a   : > { %v1476_v18 = vpop.xlane.xlu0 %1475  ;;  %2196 = vmatpush3.bf16.msra.mxu0 %v2495_v34 }
 0x83b   : > { %v1485_v19 = vadd.f32 1e-05, %v1481_v17  ;;  %v1478_v21 = vmul.f32 0.0078125, %v1476_v18  ;;  %2197 = vmatprep.subr.bf16.mxu0 %v2496_v44 }
 0x83d   : > { %2530 = vrsqrt.f32 %v1485_v19  ;;  %v1482_v22 = vsub.f32 %v1478_v21, %v1480_v20 }
 0x83e   : > { %2198 = vmatpush3.bf16.msra.mxu0 %v2497_v45 }
 0x83f   : > { %v1486_v1 = vadd.f32 1e-05, %v1482_v22 }
 0x841   : > { %2532 = vrsqrt.f32 %v1486_v1 }
 0x84a   : > { %v2531_v24 = vpop.eup %2530 }
 0x84b   : > { %v1489_v25 = vmul.f32 %v2531_v24, %v1483_v23 }
 0x84d   : > { %v1497_v32 = vmul.f32 %v2092_v26, %v1489_v25  ;;  %v2127_v25 = vld [vmem:[%s3289_s12] ss:$0 sm:$0xff] }
 0x84e   : > { %v2533_v30 = vpop.eup %2532 }
 0x84f   : > { %v1490_v31 = vmul.f32 %v2533_v30, %v1484_v27  ;;  %v1505_v38 = vadd.f32 %v2093_v33, %v1497_v32  ;;  %v2128_v32 = vld [vmem:[%s3340_s14] ss:$0 sm:$0xff] }
 0x851   : > { %v1498_v37 = vmul.f32 %v2092_v26, %v1490_v31 }
 0x853   : > { %v1506_v39 = vadd.f32 %v2093_v33, %v1498_v37 }
 0x855   : > { %v1507_v41 = vpack.c.bf16 %v1506_v39, %v1505_v38 }
 0x857   : > { %1649 = vmatmul.mubr.bf16.vlgmr.msra.gmra.mxu1 %v1507_v41 }
 0x917   : > { %v1650_v47 = vpop.f32.mrf.mxu1 }
 0x918   : > { %v1651_v52 = vadd.f32 %v1650_v47, %v1529_v48 }
 0x919   : > { %v1652_v49 = vpop.f32.mrf.mxu1 }
 0x91a   : > { %v1653_v29 = vadd.f32 %v1652_v49, %v1533_v28  ;;  %v1659_v58 = vmax.f32 %v1651_v52, 0.0 }
 0x91b   : > { %v1654_v50 = vpop.f32.mrf.mxu1 }
 0x91c   : > { %v1655_v51 = vadd.f32 %v1654_v50, %v1529_v48  ;;  %v1660_v56 = vmax.f32 %v1653_v29, 0.0 }
 0x91d   : > { %v1656_v53 = vpop.f32.mrf.mxu1 }
 0x91e   : > { %v1657_v54 = vadd.f32 %v1656_v53, %v1533_v28  ;;  %v1661_v55 = vmax.f32 %v1655_v51, 0.0 }
 0x920   : > { %v1662_v57 = vmax.f32 %v1657_v54, 0.0  ;;  %v1663_v61 = vpack.c.bf16 %v1661_v55, %v1659_v58 }
 0x922   : > { %v1664_v59 = vpack.c.bf16 %v1662_v57, %v1660_v56 }
 0x924   : > { %1832 = vmatprep.mubr.bf16.mxu0 %v1664_v59 }
 0x925   : > { %1833 = vmatmul.mubr.bf16.vlgmr.msra.gmra.mxu0 %v1663_v61 }
 0x9e5   : > { %v2199_v62 = vpop.f32.mrf.mxu0 }
 0x9e7   : > { %v2200_v36 = vpop.f32.mrf.mxu0 }
 0x9e8   : > { %v2201_v43 = vadd.f32 %v2200_v36, %v2199_v62 }
 0x9e9   : > { %v2202_v63 = vpop.f32.mrf.mxu0 }
 0x9ea   : > { %v1835_v0 = vadd.f32 %v2201_v43, %v2110_v35 }
 0x9eb   : > { %v2203_v2 = vpop.f32.mrf.mxu0 }
 0x9ec   : > { %v2204_v3 = vadd.f32 %v2203_v2, %v2202_v63  ;;  %v1841_v4 = vadd.f32 %v1835_v0, %v1505_v38 }
 0x9ee   : > { %v1838_v5 = vadd.f32 %v2204_v3, %v2110_v35  ;;  %1845 = vadd.xlane.f32.xlu0 %v1841_v4  ;;  %v1851_v7 = vmul.f32 %v1841_v4, %v1841_v4 }
 0x9f0   : > { %v1842_v6 = vadd.f32 %v1838_v5, %v1506_v39 }
 0x9f2   : > { %1847 = vadd.xlane.f32.xlu1 %v1842_v6  ;;  %1853 = vadd.xlane.f32.xlu0 %v1851_v7  ;;  %v1852_v8 = vmul.f32 %v1842_v6, %v1842_v6 }
 0x9f6   : > { %1855 = vadd.xlane.f32.xlu1 %v1852_v8 }
 0xa77   : > { %v1846_v9 = vpop.xlane.xlu0 %1845 }
 0xa78   : > { %v1849_v10 = vmul.f32 0.0078125, %v1846_v9 }
 0xa7a   : > { %v1859_v13 = vmul.f32 %v1849_v10, %v1849_v10  ;;  %v1863_v1 = vsub.f32 %v1841_v4, %v1849_v10 }
 0xa7b   : > { %v1848_v11 = vpop.xlane.xlu1 %1847  ;;  %v1854_v12 = vpop.xlane.xlu0 %1853 }
 0xa7c   : > { %v1850_v14 = vmul.f32 0.0078125, %v1848_v11  ;;  %v1857_v15 = vmul.f32 0.0078125, %v1854_v12 }
 0xa7e   : > { %v1861_v16 = vsub.f32 %v1857_v15, %v1859_v13  ;;  %v1860_v18 = vmul.f32 %v1850_v14, %v1850_v14  ;;  %v1864_v26 = vsub.f32 %v1842_v6, %v1850_v14 }
 0xa7f   : > { %v1856_v17 = vpop.xlane.xlu1 %1855 }
 0xa80   : > { %v1865_v19 = vadd.f32 1e-05, %v1861_v16  ;;  %v1858_v20 = vmul.f32 0.0078125, %v1856_v17 }
 0xa82   : > { %2534 = vrsqrt.f32 %v1865_v19  ;;  %v1862_v21 = vsub.f32 %v1858_v20, %v1860_v18 }
 0xa84   : > { %v1866_v22 = vadd.f32 1e-05, %v1862_v21 }
 0xa86   : > { %2536 = vrsqrt.f32 %v1866_v22 }
 0xa8f   : > { %v2535_v23 = vpop.eup %2534 }
 0xa90   : > { %v1869_v24 = vmul.f32 %v2535_v23, %v1863_v1 }
 0xa92   : > { %v1877_v30 = vmul.f32 %v2127_v25, %v1869_v24 }
 0xa93   : > { %v2537_v27 = vpop.eup %2536 }
 0xa94   : > { %v1870_v31 = vmul.f32 %v2537_v27, %v1864_v26  ;;  %v1885_v37 = vadd.f32 %v2128_v32, %v1877_v30 }
 0xa96   : > { %v1878_v33 = vmul.f32 %v2127_v25, %v1870_v31 }
 0xa98   : > { %v1886_v38 = vadd.f32 %v2128_v32, %v1878_v33 }
 0xa9a   : > { %v2147_v39 = vpack.c.bf16 %v1886_v38, %v1885_v37 }
 0xa9c   : > { %2148 = vst [vmem:[%s558_s18] sm:$0xff] %v2147_v39  }
 0xa9d   : > { %2709 = shalt.err (!%p2706_p3)
}
 0xa9e   : > { %s2710_s8 = scalar_lea.hbm %s3230_s21, 128  ;;  %s2714_s14 = scalar_lea.hbm %s3341_s28, 256 }
 0xa9f   : > { %p2711_p4 = scmp.ne.s32.totalorder %s3230_s21, %s2710_s8  ;;  %p2715_p2 = scmp.lt.s32.totalorder %s3230_s21, %s3341_s28 }
 0xaa0   : > { %p2716_p7 = scmp.lt.s32.totalorder %s2714_s14, %s2710_s8 }
 0xaa1   : > { %p2712_p12 = pnand %p2711_p4, %p3342_p11 }
 0xaa2   : > { %p2717_p8 = por %p2716_p7, %p2715_p2 }
 0xaa3   : > { %p2713_p6 = pneg %p2712_p12 }
 0xaa5   : > { %p2718_p10 = pnand %p2717_p8, %p2713_p6 }
 0xaa7   : > { %2721 = shalt.err (!%p2718_p10)
}
 0xaa8   : > { %s2793_s4 = smov 4  }
 0xaa9   : > { %2315 = dma.vmem_to_hbm [thread:$0]  (%p3342_p11), %s3232_s22, 128, %s3230_s21, %s1898_s1, %s2791_s13, %s2791_s13, %s2793_s4  }
 0xaaa PF: > { %s1926_s24 = sand.u32 1, %s2760_s29   ;;  %p3343_p0 = scmp.ne.s32.totalorder %s3330_s17, 0 }
 0xaab   : > { %p3344_p13 = scmp.ge.s32.totalorder %s2772_s16, 2  ;;  %s1927_s23 = scalar_lea.sflag [#allocation4], %s1926_s24 }
 0xaad   : > { %p2338_p5 = pnand %p3344_p13, %p3343_p0 }
 0xaaf   : > { %p2339_p9 = pneg %p2338_p5 }
 0xab1   : > { %2755 = dma.done.wait (%p2339_p9), %s1927_s23, 128  }
 0xab2   : > { %2757 = vsyncadd (%p2339_p9), %s1927_s23, 4294967168  ;;  %s3345_s16 = sld [smem:[#allocation20_spill]]  ;;  %s3348_s29 = smov %s2764_s30 }
 0xab3   : > { %s3346_s27 = sld [smem:[#allocation19_spill]] }
 0xab4   : > { %s3347_s15 = sld [smem:[#allocation21_spill]] }
 0xab8   : > { %p30_p1 = scmp.ge.s32.totalorder %s3345_s16, 4  }
 0xab9   : > { %s3349_s30 = smov %s3346_s27 }
 0xaba   :  { %32 = sbr.rel (!%p30_p1) target bundleno = 16 (0x10), region = 141 }
 0xabf   :  { %1932 = vsyncpa [#allocation3], 1 }
 0xac0   :  { %1934 = vsyncpa [#allocation3 + $0x1], 1 }
 0xac1   :  { %1935 = vsyncpa [#allocation6], 1 }
 0xac2   :  { %1936 = vsyncpa [#allocation9], 1 }
 0xac3   :  { %1937 = vsyncpa [#allocation12], 1 }
 0xac4   :  { %1938 = vsyncpa [#allocation4], 1 }
 0xac5   :  { %1940 = vsyncpa [#allocation4 + $0x1], 1 }

</bundles_post_ra>
